<compile_context>
chip_gen: v7x
topology: tpu7x:2x2x1
jax: 0.10.0
libtpu: 0.0.40
codegen_flags: <defaults>
</compile_context>

<pallas_src>
import functools

import jax
import jax.numpy as jnp
from jax import lax
from jax.experimental import pallas as pl
from jax.experimental.pallas import tpu as pltpu


def _round_up(x, m):
    return ((x + m - 1) // m) * m


def _snnl_kernel(emb_i_ref, emb_j_ref, lab_row_ref, lab_col_ref, out_ref,
                 en_i_ref, sum_all_ref, sum_same_ref, *,
                 temperature, eps, n_valid, block_n, need_col_mask,
                 use_bf16_matmul):
    j = pl.program_id(1)
    nj = pl.num_programs(1)
    inv_t = 1.0 / temperature

    # ---- once per i-tile: normalize the LHS rows, zero the accumulators ----
    @pl.when(j == 0)
    def _init():
        e_i = emb_i_ref[...]                                       # (TM, D) f32
        nrm = jnp.sqrt(jnp.sum(e_i * e_i, axis=1, keepdims=True))
        en_i_ref[...] = e_i / jnp.maximum(nrm, 1e-12)
        sum_all_ref[...] = jnp.zeros_like(sum_all_ref)
        sum_same_ref[...] = jnp.zeros_like(sum_same_ref)

    en_i = en_i_ref[...]                                           # (TM, D)

    # normalize the RHS tile (changes every j step)
    e_j = emb_j_ref[...]                                           # (TN, D)
    nrm_j = jnp.sqrt(jnp.sum(e_j * e_j, axis=1, keepdims=True))
    en_j = e_j / jnp.maximum(nrm_j, 1e-12)

    # cosine similarity on the MXU, contracting dim 1 of both operands
    # directly (no transposed copy of the RHS tile).
    if use_bf16_matmul:
        lhs, rhs = en_i.astype(jnp.bfloat16), en_j.astype(jnp.bfloat16)
    else:
        lhs, rhs = en_i, en_j
    sim = lax.dot_general(lhs, rhs,
                          dimension_numbers=(((1,), (1,)), ((), ())),
                          preferred_element_type=jnp.float32)      # (TM, TN)

    # exp(-(1 - sim) / T) in one fused elementwise pass (f32 on the EUP)
    negexpd = jnp.exp((sim - 1.0) * inv_t)                         # (TM, TN)

    # mask out padded (invalid) columns; statically skipped when B is aligned
    if need_col_mask:
        col_idx = j * block_n + lax.broadcasted_iota(jnp.int32, (1, block_n), 1)
        negexpd = jnp.where(col_idx < n_valid, negexpd, 0.0)

    # same-label selection without materializing an f32 mask
    lab_eq = lab_col_ref[...] == lab_row_ref[...]                  # (TM,1)==(1,TN)->(TM,TN)
    same = jnp.where(lab_eq, negexpd, 0.0)

    sum_all_ref[...] += jnp.sum(negexpd, axis=1, keepdims=True)    # (TM, 1)
    sum_same_ref[...] += jnp.sum(same, axis=1, keepdims=True)      # (TM, 1)

    # ---- once per i-tile: remove the diagonal, emit per-row log-ratio ----
    @pl.when(j == nj - 1)
    def _finalize():
        # diagonal of negexpd from the actually-computed row norms
        # (handles zero rows, where sim_ii == 0 rather than 1)
        sim_ii = jnp.sum(en_i * en_i, axis=1, keepdims=True)       # (TM, 1)
        diag = jnp.exp((sim_ii - 1.0) * inv_t)
        alcn = sum_all_ref[...] - diag            # all columns except self
        sacn = sum_same_ref[...]                  # same-label (diag included, as in torch ref)
        out_ref[...] = jnp.log((sacn + eps) / alcn)


def soft_nearest_neighbor_loss(embeddings, labels, *, temperature=100.0,
                               block_size=256, use_bf16_matmul=False):
    """embeddings: [B, D] float, labels: [B] int. Returns scalar f32 SNNL."""
    B, D = embeddings.shape
    assert block_size % 128 == 0, "block_size must be a multiple of 128"
    t = min(block_size, _round_up(B, 128))     # tile (multiple of 128)
    bp = _round_up(B, t)                        # padded batch
    num_tiles = bp // t

    emb = jnp.pad(embeddings.astype(jnp.float32), ((0, bp - B), (0, 0)))
    lab = jnp.pad(labels.astype(jnp.int32), (0, bp - B))
    lab_row = lab.reshape(1, bp)                # labels[j] along lanes
    lab_col = lab.reshape(bp, 1)                # labels[i] along sublanes

    kernel = functools.partial(
        _snnl_kernel,
        temperature=float(temperature),
        eps=1e-9,
        n_valid=B,
        block_n=t,
        need_col_mask=(bp != B),
        use_bf16_matmul=use_bf16_matmul,
    )

    log_ratio = pl.pallas_call(
        kernel,
        out_shape=jax.ShapeDtypeStruct((bp, 1), jnp.float32),
        grid_spec=pltpu.PrefetchScalarGridSpec(
            num_scalar_prefetch=0,
            grid=(num_tiles, num_tiles),
            in_specs=[
                pl.BlockSpec((t, D), lambda i, j: (i, 0)),   # LHS row tile
                pl.BlockSpec((t, D), lambda i, j: (j, 0)),   # RHS row tile
                pl.BlockSpec((1, t), lambda i, j: (0, j)),   # labels as a row
                pl.BlockSpec((t, 1), lambda i, j: (i, 0)),   # labels as a column
            ],
            out_specs=pl.BlockSpec((t, 1), lambda i, j: (i, 0)),
            scratch_shapes=[
                pltpu.VMEM((t, D), jnp.float32),   # normalized LHS tile
                pltpu.VMEM((t, 1), jnp.float32),   # running sum over all columns
                pltpu.VMEM((t, 1), jnp.float32),   # running sum over same-label columns
            ],
        ),
        compiler_params=pltpu.CompilerParams(
            dimension_semantics=("parallel", "arbitrary"),
            vmem_limit_bytes=32 * 1024 * 1024,
        ),
    )(emb, emb, lab_row, lab_col)

    return -jnp.mean(log_ratio[:B, 0])


def _reference(embeddings, labels, temperature=100.0):
    eps = 1e-9
    en = embeddings / jnp.maximum(
        jnp.linalg.norm(embeddings, axis=1, keepdims=True), 1e-12)
    dist = (1.0 - en @ en.T) / temperature
    negexpd = jnp.exp(-dist)
    mask = (labels[:, None] == labels[None, :]).astype(jnp.float32)
    B = embeddings.shape[0]
    dmask = jnp.ones((B, B), jnp.float32) - jnp.eye(B, dtype=jnp.float32)
    alcn = jnp.sum(negexpd * dmask, axis=1)
    sacn = jnp.sum(negexpd * mask, axis=1)
    return -jnp.mean(jnp.log((sacn + eps) / alcn))


if __name__ == "__main__":
    key = jax.random.PRNGKey(0)
    k_emb, k_lab = jax.random.split(key)
    B, D = 8, 32
    embeddings = jax.random.normal(k_emb, (B, D), dtype=jnp.float32)
    labels = jax.random.randint(k_lab, (B,), 0, 3, dtype=jnp.int32)

    # default f32 MXU path
    loss = soft_nearest_neighbor_loss(embeddings, labels, temperature=100.0)
    loss = jax.block_until_ready(loss)

    ref = _reference(embeddings, labels, temperature=100.0)
    assert jnp.allclose(loss, ref, rtol=1e-4, atol=1e-5), (loss, ref)

    # bf16-MXU fast path (v6e/v7x); temperature=100 attenuates the bf16
    # rounding of the similarities, so the loss stays very close to f32.
    loss_bf16 = soft_nearest_neighbor_loss(
        embeddings, labels, temperature=100.0, use_bf16_matmul=True)
    loss_bf16 = jax.block_until_ready(loss_bf16)
    assert jnp.allclose(loss_bf16, ref, rtol=1e-2, atol=1e-2), (loss_bf16, ref)

    print("KERNEL_OK")
</pallas_src>

<mosaic_0001>
module attributes {stable_mosaic.version = 11 : i64} {
  func.func @_snnl_kernel(%arg0: i32, %arg1: i32, %arg2: memref<128x32xf32, #tpu.memory_space<vmem>>, %arg3: memref<128x32xf32, #tpu.memory_space<vmem>>, %arg4: memref<1x128xi32, #tpu.memory_space<vmem>>, %arg5: memref<128x1xi32, #tpu.memory_space<vmem>>, %arg6: memref<128x1xf32, #tpu.memory_space<vmem>>, %arg7: memref<128x32xf32, #tpu.memory_space<vmem>>, %arg8: memref<128x1xf32, #tpu.memory_space<vmem>>, %arg9: memref<128x1xf32, #tpu.memory_space<vmem>>) attributes {dimension_semantics = [#tpu.dimension_semantics<parallel>, #tpu.dimension_semantics<arbitrary>], iteration_bounds = array<i64: 1, 1>, scalar_prefetch = 0 : i64, scratch_operands = 3 : i64, tpu.core_type = #tpu.core_type<tc>, window_params = [{transform_indices = @transform_0, window_bounds = array<i64: 128, 32>}, {transform_indices = @transform_1, window_bounds = array<i64: 128, 32>}, {transform_indices = @transform_2, window_bounds = array<i64: 1, 128>}, {transform_indices = @transform_3, window_bounds = array<i64: 128, 1>}, {transform_indices = @transform_4, window_bounds = array<i64: 128, 1>}]} {
    %c0_i32 = arith.constant 0 : i32
    %0 = arith.cmpi eq, %arg1, %c0_i32 : i32
    %1 = arith.extui %0 : i1 to i32
    %c0_i32_0 = arith.constant 0 : i32
    %2 = arith.cmpi ne, %1, %c0_i32_0 : i32
    scf.if %2 {
      %c0_26 = arith.constant 0 : index
      %c0_27 = arith.constant 0 : index
      %49 = vector.load %arg2[%c0_26, %c0_27] : memref<128x32xf32, #tpu.memory_space<vmem>>, vector<128x32xf32>
      %50 = arith.mulf %49, %49 : vector<128x32xf32>
      %cst_28 = arith.constant dense<0.000000e+00> : vector<128xf32>
      %51 = vector.multi_reduction <add>, %50, %cst_28 [1] : vector<128x32xf32> to vector<128xf32>
      %52 = vector.shape_cast %51 : vector<128xf32> to vector<128x1xf32>
      %53 = math.sqrt %52 : vector<128x1xf32>
      %cst_29 = arith.constant 9.99999996E-13 : f32
      %54 = vector.broadcast %cst_29 : f32 to vector<128x1xf32>
      %55 = arith.maximumf %53, %54 : vector<128x1xf32>
      %56 = vector.broadcast %55 : vector<128x1xf32> to vector<128x32xf32>
      %57 = arith.divf %49, %56 : vector<128x32xf32>
      %c0_30 = arith.constant 0 : index
      %c0_31 = arith.constant 0 : index
      %58 = vector.load %arg7[%c0_30, %c0_31] : memref<128x32xf32, #tpu.memory_space<vmem>>, vector<128x32xf32>
      tpu.vector_store %arg7[%c0_30, %c0_31], %57 {strides = array<i32>} : memref<128x32xf32, #tpu.memory_space<vmem>>, vector<128x32xf32>,
      %cst_32 = arith.constant 0.000000e+00 : f32
      %59 = vector.broadcast %cst_32 : f32 to vector<128x1xf32>
      %c0_33 = arith.constant 0 : index
      %c0_34 = arith.constant 0 : index
      %60 = vector.load %arg8[%c0_33, %c0_34] : memref<128x1xf32, #tpu.memory_space<vmem>>, vector<128x1xf32>
      tpu.vector_store %arg8[%c0_33, %c0_34], %59 {strides = array<i32>} : memref<128x1xf32, #tpu.memory_space<vmem>>, vector<128x1xf32>,
      %cst_35 = arith.constant 0.000000e+00 : f32
      %61 = vector.broadcast %cst_35 : f32 to vector<128x1xf32>
      %c0_36 = arith.constant 0 : index
      %c0_37 = arith.constant 0 : index
      %62 = vector.load %arg9[%c0_36, %c0_37] : memref<128x1xf32, #tpu.memory_space<vmem>>, vector<128x1xf32>
      tpu.vector_store %arg9[%c0_36, %c0_37], %61 {strides = array<i32>} : memref<128x1xf32, #tpu.memory_space<vmem>>, vector<128x1xf32>,
    } else {
    }
    %c0 = arith.constant 0 : index
    %c0_1 = arith.constant 0 : index
    %3 = vector.load %arg7[%c0, %c0_1] : memref<128x32xf32, #tpu.memory_space<vmem>>, vector<128x32xf32>
    %c0_2 = arith.constant 0 : index
    %c0_3 = arith.constant 0 : index
    %4 = vector.load %arg3[%c0_2, %c0_3] : memref<128x32xf32, #tpu.memory_space<vmem>>, vector<128x32xf32>
    %5 = arith.mulf %4, %4 : vector<128x32xf32>
    %cst = arith.constant dense<0.000000e+00> : vector<128xf32>
    %6 = vector.multi_reduction <add>, %5, %cst [1] : vector<128x32xf32> to vector<128xf32>
    %7 = vector.shape_cast %6 : vector<128xf32> to vector<128x1xf32>
    %8 = math.sqrt %7 : vector<128x1xf32>
    %cst_4 = arith.constant 9.99999996E-13 : f32
    %9 = vector.broadcast %cst_4 : f32 to vector<128x1xf32>
    %10 = arith.maximumf %8, %9 : vector<128x1xf32>
    %11 = vector.broadcast %10 : vector<128x1xf32> to vector<128x32xf32>
    %12 = arith.divf %4, %11 : vector<128x32xf32>
    %cst_5 = arith.constant dense<0.000000e+00> : vector<128x128xf32>
    %13 = tpu.matmul %3, %12, %cst_5 {dimension_numbers = #tpu.dot_dimension_numbers<[1], [1], [0], [0], [0, 0, 1, 0], [], []>} : vector<128x32xf32>, vector<128x32xf32>, vector<128x128xf32> -> vector<128x128xf32>
    %cst_6 = arith.constant 1.000000e+00 : f32
    %14 = vector.broadcast %cst_6 : f32 to vector<128x128xf32>
    %15 = arith.subf %13, %14 : vector<128x128xf32>
    %cst_7 = arith.constant 0.00999999977 : f32
    %16 = vector.broadcast %cst_7 : f32 to vector<128x128xf32>
    %17 = arith.mulf %15, %16 : vector<128x128xf32>
    %18 = math.exp %17 : vector<128x128xf32>
    %c128_i32 = arith.constant 128 : i32
    %19 = arith.muli %arg1, %c128_i32 : i32
    %20 = tpu.iota {dimensions = array<i32: 1>} : vector<1x128xi32>
    %21 = vector.broadcast %19 : i32 to vector<1x128xi32>
    %22 = arith.addi %21, %20 : vector<1x128xi32>
    %c8_i32 = arith.constant 8 : i32
    %23 = vector.broadcast %c8_i32 : i32 to vector<1x128xi32>
    %24 = arith.cmpi slt, %22, %23 : vector<1x128xi32>
    %cst_8 = arith.constant 0.000000e+00 : f32
    %25 = vector.shape_cast %24 : vector<1x128xi1> to vector<1x128xi1>
    %26 = vector.broadcast %25 : vector<1x128xi1> to vector<128x128xi1>
    %27 = vector.broadcast %cst_8 : f32 to vector<128x128xf32>
    %28 = arith.select %26, %18, %27 : vector<128x128xi1>, vector<128x128xf32>
    %c0_9 = arith.constant 0 : index
    %c0_10 = arith.constant 0 : index
    %29 = vector.load %arg5[%c0_9, %c0_10] : memref<128x1xi32, #tpu.memory_space<vmem>>, vector<128x1xi32>
    %c0_11 = arith.constant 0 : index
    %c0_12 = arith.constant 0 : index
    %30 = vector.load %arg4[%c0_11, %c0_12] : memref<1x128xi32, #tpu.memory_space<vmem>>, vector<1x128xi32>
    %31 = vector.broadcast %29 : vector<128x1xi32> to vector<128x128xi32>
    %32 = vector.broadcast %30 : vector<1x128xi32> to vector<128x128xi32>
    %33 = arith.cmpi eq, %31, %32 : vector<128x128xi32>
    %cst_13 = arith.constant 0.000000e+00 : f32
    %34 = vector.broadcast %cst_13 : f32 to vector<128x128xf32>
    %35 = arith.select %33, %28, %34 : vector<128x128xi1>, vector<128x128xf32>
    %c0_14 = arith.constant 0 : index
    %c0_15 = arith.constant 0 : index
    %36 = vector.load %arg8[%c0_14, %c0_15] : memref<128x1xf32, #tpu.memory_space<vmem>>, vector<128x1xf32>
    %cst_16 = arith.constant dense<0.000000e+00> : vector<128xf32>
    %37 = vector.multi_reduction <add>, %28, %cst_16 [1] : vector<128x128xf32> to vector<128xf32>
    %38 = vector.shape_cast %37 : vector<128xf32> to vector<128x1xf32>
    %39 = arith.addf %36, %38 : vector<128x1xf32>
    %c0_17 = arith.constant 0 : index
    %c0_18 = arith.constant 0 : index
    %40 = vector.load %arg8[%c0_17, %c0_18] : memref<128x1xf32, #tpu.memory_space<vmem>>, vector<128x1xf32>
    tpu.vector_store %arg8[%c0_17, %c0_18], %39 {strides = array<i32>} : memref<128x1xf32, #tpu.memory_space<vmem>>, vector<128x1xf32>,
    %c0_19 = arith.constant 0 : index
    %c0_20 = arith.constant 0 : index
    %41 = vector.load %arg9[%c0_19, %c0_20] : memref<128x1xf32, #tpu.memory_space<vmem>>, vector<128x1xf32>
    %cst_21 = arith.constant dense<0.000000e+00> : vector<128xf32>
    %42 = vector.multi_reduction <add>, %35, %cst_21 [1] : vector<128x128xf32> to vector<128xf32>
    %43 = vector.shape_cast %42 : vector<128xf32> to vector<128x1xf32>
    %44 = arith.addf %41, %43 : vector<128x1xf32>
    %c0_22 = arith.constant 0 : index
    %c0_23 = arith.constant 0 : index
    %45 = vector.load %arg9[%c0_22, %c0_23] : memref<128x1xf32, #tpu.memory_space<vmem>>, vector<128x1xf32>
    tpu.vector_store %arg9[%c0_22, %c0_23], %44 {strides = array<i32>} : memref<128x1xf32, #tpu.memory_space<vmem>>, vector<128x1xf32>,
    %c0_i32_24 = arith.constant 0 : i32
    %46 = arith.cmpi eq, %arg1, %c0_i32_24 : i32
    %47 = arith.extui %46 : i1 to i32
    %c0_i32_25 = arith.constant 0 : i32
    %48 = arith.cmpi ne, %47, %c0_i32_25 : i32
    scf.if %48 {
      %49 = arith.mulf %3, %3 : vector<128x32xf32>
      %cst_26 = arith.constant dense<0.000000e+00> : vector<128xf32>
      %50 = vector.multi_reduction <add>, %49, %cst_26 [1] : vector<128x32xf32> to vector<128xf32>
      %51 = vector.shape_cast %50 : vector<128xf32> to vector<128x1xf32>
      %cst_27 = arith.constant 1.000000e+00 : f32
      %52 = vector.broadcast %cst_27 : f32 to vector<128x1xf32>
      %53 = arith.subf %51, %52 : vector<128x1xf32>
      %cst_28 = arith.constant 0.00999999977 : f32
      %54 = vector.broadcast %cst_28 : f32 to vector<128x1xf32>
      %55 = arith.mulf %53, %54 : vector<128x1xf32>
      %56 = math.exp %55 : vector<128x1xf32>
      %c0_29 = arith.constant 0 : index
      %c0_30 = arith.constant 0 : index
      %57 = vector.load %arg8[%c0_29, %c0_30] : memref<128x1xf32, #tpu.memory_space<vmem>>, vector<128x1xf32>
      %58 = arith.subf %57, %56 : vector<128x1xf32>
      %c0_31 = arith.constant 0 : index
      %c0_32 = arith.constant 0 : index
      %59 = vector.load %arg9[%c0_31, %c0_32] : memref<128x1xf32, #tpu.memory_space<vmem>>, vector<128x1xf32>
      %cst_33 = arith.constant 9.99999971E-10 : f32
      %60 = vector.broadcast %cst_33 : f32 to vector<128x1xf32>
      %61 = arith.addf %59, %60 : vector<128x1xf32>
      %62 = arith.divf %61, %58 : vector<128x1xf32>
      %63 = math.log %62 : vector<128x1xf32>
      %c0_34 = arith.constant 0 : index
      %c0_35 = arith.constant 0 : index
      %64 = vector.load %arg6[%c0_34, %c0_35] : memref<128x1xf32, #tpu.memory_space<vmem>>, vector<128x1xf32>
      tpu.vector_store %arg6[%c0_34, %c0_35], %63 {strides = array<i32>} : memref<128x1xf32, #tpu.memory_space<vmem>>, vector<128x1xf32>,
    } else {
    }
    return
  }
  func.func @transform_0(%arg0: i32, %arg1: i32) -> (i32, i32) {
    %c0_i32 = arith.constant 0 : i32
    %c0_i32_0 = arith.constant 0 : i32
    return %arg0, %c0_i32 : i32, i32
  }
  func.func @transform_1(%arg0: i32, %arg1: i32) -> (i32, i32) {
    %c0_i32 = arith.constant 0 : i32
    %c0_i32_0 = arith.constant 0 : i32
    return %arg1, %c0_i32 : i32, i32
  }
  func.func @transform_2(%arg0: i32, %arg1: i32) -> (i32, i32) {
    %c0_i32 = arith.constant 0 : i32
    %c0_i32_0 = arith.constant 0 : i32
    return %c0_i32, %arg1 : i32, i32
  }
  func.func @transform_3(%arg0: i32, %arg1: i32) -> (i32, i32) {
    %c0_i32 = arith.constant 0 : i32
    %c0_i32_0 = arith.constant 0 : i32
    return %arg0, %c0_i32 : i32, i32
  }
  func.func @transform_4(%arg0: i32, %arg1: i32) -> (i32, i32) {
    %c0_i32 = arith.constant 0 : i32
    %c0_i32_0 = arith.constant 0 : i32
    return %arg0, %c0_i32 : i32, i32
  }
}

</mosaic_0001>

<bundles_post_ra>
// kernel: tpu_custom_call.1
= control target key start
LH: loop header
LB: loop body
LE: loop exit
PB: predicated region body
PF: predicated region fallthrough
CT: control target
= control target key end

     0   :  { %vm53_vm0 = vcmask 261120   ;;  %v1927_v52 = vmov 0   ;;  %s3037_s1 = inlined_call_operand.vmem [shape: f32[128,32], index: 1, kind: input, shape index: {}]   ;;  %s3038_s0 = inlined_call_operand.vmem [shape: f32[128,32], index: 0, kind: input, shape index: {}]   ;;  %s3039_s3 = inlined_call_operand.vmem [shape: s32[128,1], index: 3, kind: input, shape index: {}]   ;;  %s3040_s2 = inlined_call_operand.vmem [shape: s32[1,128], index: 2, kind: input, shape index: {}]   ;;  %s3041_s4 = inlined_call_operand.vmem [shape: f32[128,1], index: 4, kind: output, shape index: {}]  }
   0x1   :  { %v1957_v0 = vld [vmem:[%s3037_s1 + $0x10] sm:$0xff]  ;;  %v1962_v1 = vld [vmem:[%s3037_s1] sm:$0xff]  ;;  %v1967_v2 = vld [vmem:[%s3037_s1 + $0x18] sm:$0xff]  ;;  %1658 = vset.pattern.permute.xlu1 %v1927_v52  ;;  %1657 = vset.pattern.permute.xlu0 %v1927_v52 }
   0x2   :  { %v345_v3 = vmul.f32 %v1957_v0, %v1957_v0  ;;  %v343_v4 = vmul.f32 %v1962_v1, %v1962_v1  ;;  %v346_v5 = vmul.f32 %v1967_v2, %v1967_v2  ;;  %v1978_v6 = vld [vmem:[%s3037_s1 + $0x8] sm:$0xff]  ;;  %v1990_v9 = vld [vmem:[%s3037_s1 + $0x20] sm:$0xff]  ;;  %v2003_v16 = vld [vmem:[%s3037_s1 + $0x30] sm:$0xff] }
   0x3   :  { %v344_v7 = vmul.f32 %v1978_v6, %v1978_v6  ;;  %v1985_v8 = vld [vmem:[%s3037_s1 + $0x28] sm:$0xff]  ;;  %v347_v15 = vmul.f32 %v1990_v9, %v1990_v9  ;;  %v2008_v17 = vld [vmem:[%s3037_s1 + $0x38] sm:$0xff]  ;;  %v349_v20 = vmul.f32 %v2003_v16, %v2003_v16  ;;  %v2019_v22 = vld [vmem:[%s3037_s1 + $0x40] sm:$0xff] }
   0x4   :  { %v366_v10 = vsel %vm53_vm0, %v345_v3, 0.0  ;;  %v360_v11 = vsel %vm53_vm0, %v343_v4, 0.0  ;;  %v369_v12 = vsel %vm53_vm0, %v346_v5, 0.0  ;;  %v348_v14 = vmul.f32 %v1985_v8, %v1985_v8  ;;  %v2024_v23 = vld [vmem:[%s3037_s1 + $0x48] sm:$0xff]  ;;  %v2035_v28 = vld [vmem:[%s3037_s1 + $0x50] sm:$0xff]  ;;  %v338_v29 = vld [vmem:[%s3037_s1 + $0x58] sm:$0xff] }
   0x5   :  { %367 = vadd.xlane.f32.xlu1 %v366_v10  ;;  %361 = vadd.xlane.f32.xlu0 %v360_v11  ;;  %v363_v13 = vsel %vm53_vm0, %v344_v7, 0.0  ;;  %v372_v19 = vsel %vm53_vm0, %v347_v15, 0.0  ;;  %v350_v21 = vmul.f32 %v2008_v17, %v2008_v17  ;;  %v378_v24 = vsel %vm53_vm0, %v349_v20, 0.0  ;;  %v339_v34 = vld [vmem:[%s3037_s1 + $0x60] sm:$0xff]  ;;  %v340_v35 = vld [vmem:[%s3037_s1 + $0x68] sm:$0xff]  ;;  %v341_v40 = vld [vmem:[%s3037_s1 + $0x70] sm:$0xff] }
   0x6   :  { %v375_v18 = vsel %vm53_vm0, %v348_v14, 0.0  ;;  %v351_v26 = vmul.f32 %v2019_v22, %v2019_v22  ;;  %v352_v27 = vmul.f32 %v2024_v23, %v2024_v23  ;;  %v353_v31 = vmul.f32 %v2035_v28, %v2035_v28  ;;  %v342_v41 = vld [vmem:[%s3037_s1 + $0x78] sm:$0xff]  ;;  %v2063_v46 = vld [vmem:[%s3038_s0] sm:$0xff]  ;;  %v2079_v53 = vld [vmem:[%s3038_s0 + $0x8] sm:$0xff] }
   0x7   :  { %v381_v25 = vsel %vm53_vm0, %v350_v21, 0.0  ;;  %v354_v33 = vmul.f32 %v338_v29, %v338_v29  ;;  %v355_v37 = vmul.f32 %v339_v34, %v339_v34  ;;  %v356_v39 = vmul.f32 %v340_v35, %v340_v35  ;;  %v2068_v47 = vld [vmem:[%s3038_s0 + $0x40] sm:$0xff]  ;;  %v2084_v54 = vld [vmem:[%s3038_s0 + $0x48] sm:$0xff]  ;;  %v2095_v59 = vld [vmem:[%s3038_s0 + $0x10] sm:$0xff] }
   0x8   :  { %v384_v30 = vsel %vm53_vm0, %v351_v26, 0.0  ;;  %v387_v32 = vsel %vm53_vm0, %v352_v27, 0.0  ;;  %v390_v36 = vsel %vm53_vm0, %v353_v31, 0.0  ;;  %v357_v43 = vmul.f32 %v341_v40, %v341_v40  ;;  %v31_v60 = vld [vmem:[%s3038_s0 + $0x50] sm:$0xff]  ;;  %v2107_v4 = vld [vmem:[%s3038_s0 + $0x18] sm:$0xff]  ;;  %v33_v14 = vld [vmem:[%s3038_s0 + $0x60] sm:$0xff] }
   0x9   :  { %370 = vadd.xlane.f32.xlu1 %v369_v12  ;;  %364 = vadd.xlane.f32.xlu0 %v363_v13  ;;  %v393_v38 = vsel %vm53_vm0, %v354_v33, 0.0  ;;  %v396_v42 = vsel %vm53_vm0, %v355_v37, 0.0  ;;  %v399_v44 = vsel %vm53_vm0, %v356_v39, 0.0  ;;  %v358_v45 = vmul.f32 %v342_v41, %v342_v41  ;;  %v32_v5 = vld [vmem:[%s3038_s0 + $0x58] sm:$0xff]  ;;  %v2119_v13 = vld [vmem:[%s3038_s0 + $0x20] sm:$0xff]  ;;  %v2131_v21 = vld [vmem:[%s3038_s0 + $0x28] sm:$0xff] }
   0xa   :  { %v402_v48 = vsel %vm53_vm0, %v357_v43, 0.0  ;;  %v37_v49 = vmul.f32 %v2063_v46, %v2063_v46  ;;  %v45_v51 = vmul.f32 %v2068_v47, %v2068_v47  ;;  %v38_v56 = vmul.f32 %v2079_v53, %v2079_v53  ;;  %v35_v31 = vld [vmem:[%s3038_s0 + $0x70] sm:$0xff]  ;;  %v36_v37 = vld [vmem:[%s3038_s0 + $0x78] sm:$0xff] }
   0xb   :  { %v405_v50 = vsel %vm53_vm0, %v358_v45, 0.0  ;;  %v46_v58 = vmul.f32 %v2084_v54, %v2084_v54  ;;  %v39_v62 = vmul.f32 %v2095_v59, %v2095_v59  ;;  %v47_v3 = vmul.f32 %v31_v60, %v31_v60  ;;  %v899_v45 = vld [vmem:[%s3039_s3 + $0x10] sm:$0xff]  ;;  %v908_v52 = vld [vmem:[%s3039_s3 + $0x58] sm:$0xff] }
   0xc   :  { %v54_v55 = vsel %vm53_vm0, %v37_v49, 0.0  ;;  %v78_v57 = vsel %vm53_vm0, %v45_v51, 0.0  ;;  %v57_v61 = vsel %vm53_vm0, %v38_v56, 0.0  ;;  %v40_v10 = vmul.f32 %v2107_v4, %v2107_v4  ;;  %v900_v49 = vld [vmem:[%s3039_s3 + $0x18] sm:$0xff]  ;;  %v901_v51 = vld [vmem:[%s3039_s3 + $0x20] sm:$0xff]  ;;  %v910_v56 = vld [vmem:[%s3039_s3 + $0x68] sm:$0xff] }
   0xd   :  { %376 = vadd.xlane.f32.xlu1 %v375_v18  ;;  %373 = vadd.xlane.f32.xlu0 %v372_v19  ;;  %v81_v63 = vsel %vm53_vm0, %v46_v58, 0.0  ;;  %v60_v7 = vsel %vm53_vm0, %v39_v62, 0.0  ;;  %v84_v11 = vsel %vm53_vm0, %v47_v3, 0.0  ;;  %v48_v12 = vmul.f32 %v32_v5, %v32_v5  ;;  %v912_v58 = vld [vmem:[%s3039_s3 + $0x78] sm:$0xff]  ;;  %v907_v62 = vld [vmem:[%s3039_s3 + $0x50] sm:$0xff] }
   0xe   :  { %v63_v15 = vsel %vm53_vm0, %v40_v10, 0.0  ;;  %v41_v18 = vmul.f32 %v2119_v13, %v2119_v13  ;;  %v49_v20 = vmul.f32 %v33_v14, %v33_v14  ;;  %v42_v26 = vmul.f32 %v2131_v21, %v2131_v21  ;;  %v904_v60 = vld [vmem:[%s3039_s3 + $0x38] sm:$0xff]  ;;  %v911_v3 = vld [vmem:[%s3039_s3 + $0x70] sm:$0xff] }
   0xf   :  { %v87_v19 = vsel %vm53_vm0, %v48_v12, 0.0  ;;  %v51_v35 = vmul.f32 %v35_v31, %v35_v31  ;;  %v52_v41 = vmul.f32 %v36_v37, %v36_v37 }
  0x10   :  { %v90_v27 = vsel %vm53_vm0, %v49_v20, 0.0 }
  0x11   :  { %379 = vadd.xlane.f32.xlu0 %v378_v24  ;;  %382 = vadd.xlane.f32.xlu1 %v381_v25  ;;  %v34_v24 = vld [vmem:[%s3038_s0 + $0x68] sm:$0xff]  ;;  %v66_v25 = vsel %vm53_vm0, %v41_v18, 0.0  ;;  %v96_v40 = vsel %vm53_vm0, %v51_v35, 0.0  ;;  %v99_v43 = vsel %vm53_vm0, %v52_v41, 0.0 }
  0x12   :  { %v50_v29 = vmul.f32 %v34_v24, %v34_v24 }
  0x14   :  { %v93_v34 = vsel %vm53_vm0, %v50_v29, 0.0 }
  0x15   :  { %385 = vadd.xlane.f32.xlu0 %v384_v30  ;;  %388 = vadd.xlane.f32.xlu1 %v387_v32  ;;  %v2143_v30 = vld [vmem:[%s3038_s0 + $0x30] sm:$0xff]  ;;  %v69_v32 = vsel %vm53_vm0, %v42_v26, 0.0 }
  0x16   :  { %v43_v33 = vmul.f32 %v2143_v30, %v2143_v30 }
  0x19   :  { %391 = vadd.xlane.f32.xlu0 %v390_v36  ;;  %394 = vadd.xlane.f32.xlu1 %v393_v38  ;;  %v28_v36 = vld [vmem:[%s3038_s0 + $0x38] sm:$0xff]  ;;  %v72_v38 = vsel %vm53_vm0, %v43_v33, 0.0 }
  0x1a   :  { %v44_v39 = vmul.f32 %v28_v36, %v28_v36 }
  0x1d   :  { %397 = vadd.xlane.f32.xlu0 %v396_v42  ;;  %400 = vadd.xlane.f32.xlu1 %v399_v44  ;;  %v75_v42 = vsel %vm53_vm0, %v44_v39, 0.0  ;;  %v898_v44 = vld [vmem:[%s3039_s3 + $0x8] sm:$0xff] }
  0x21   :  { %403 = vadd.xlane.f32.xlu0 %v402_v48  ;;  %406 = vadd.xlane.f32.xlu1 %v405_v50  ;;  %v897_v48 = vld [vmem:[%s3039_s3] sm:$0xff]  ;;  %v906_v50 = vld [vmem:[%s3039_s3 + $0x48] sm:$0xff] }
  0x25   :  { %55 = vadd.xlane.f32.xlu0 %v54_v55  ;;  %79 = vadd.xlane.f32.xlu1 %v78_v57  ;;  %v902_v55 = vld [vmem:[%s3039_s3 + $0x28] sm:$0xff]  ;;  %v903_v57 = vld [vmem:[%s3039_s3 + $0x30] sm:$0xff] }
  0x29   :  { %58 = vadd.xlane.f32.xlu0 %v57_v61  ;;  %82 = vadd.xlane.f32.xlu1 %v81_v63  ;;  %v905_v61 = vld [vmem:[%s3039_s3 + $0x40] sm:$0xff] }
  0x2a   :  { %v909_v63 = vld [vmem:[%s3039_s3 + $0x60] sm:$0xff] }
  0x2d   :  { %61 = vadd.xlane.f32.xlu0 %v60_v7  ;;  %85 = vadd.xlane.f32.xlu1 %v84_v11 }
  0x31   :  { %64 = vadd.xlane.f32.xlu0 %v63_v15  ;;  %88 = vadd.xlane.f32.xlu1 %v87_v19 }
  0x35   :  { %67 = vadd.xlane.f32.xlu0 %v66_v25  ;;  %91 = vadd.xlane.f32.xlu1 %v90_v27 }
  0x39   :  { %70 = vadd.xlane.f32.xlu0 %v69_v32  ;;  %94 = vadd.xlane.f32.xlu1 %v93_v34 }
  0x3d   :  { %73 = vadd.xlane.f32.xlu0 %v72_v38  ;;  %97 = vadd.xlane.f32.xlu1 %v96_v40 }
  0x41   :  { %76 = vadd.xlane.f32.xlu0 %v75_v42  ;;  %100 = vadd.xlane.f32.xlu1 %v99_v43 }
  0x52   :  { %918 = vperm.xlu1 %1658, %v898_v44  }
  0x56   :  { %921 = vperm.xlu1 %1658, %v899_v45  }
  0x57   :  { %915 = vperm.xlu0 %1657, %v897_v48  }
  0x5a   :  { %924 = vperm.xlu1 %1658, %v900_v49  }
  0x5b   :  { %942 = vperm.xlu0 %1657, %v906_v50  }
  0x5e   :  { %927 = vperm.xlu1 %1658, %v901_v51  }
  0x5f   :  { %948 = vperm.xlu0 %1657, %v908_v52  }
  0x62   :  { %930 = vperm.xlu1 %1658, %v902_v55  }
  0x63   :  { %954 = vperm.xlu0 %1657, %v910_v56  }
  0x66   :  { %933 = vperm.xlu1 %1658, %v903_v57  }
  0x67   :  { %960 = vperm.xlu0 %1657, %v912_v58  }
  0x6a   :  { %936 = vperm.xlu1 %1658, %v904_v60  }
  0x6e   :  { %939 = vperm.xlu1 %1658, %v905_v61  }
  0x72   :  { %945 = vperm.xlu1 %1658, %v907_v62  }
  0x76   :  { %951 = vperm.xlu1 %1658, %v909_v63  }
  0x7a   :  { %957 = vperm.xlu1 %1658, %v911_v3  }
  0x92   :  { %v368_v5 = vpop.xlane.xlu1 %367  ;;  %v362_v7 = vpop.xlane.xlu0 %361 }
  0x93   :  { %1659 = vrsqrt.f32 %v368_v5  ;;  %vm424_vm1 = vcmp.eq.f32.partialorder %v368_v5, inf  ;;  %vm426_vm2 = vcmp.eq.f32.partialorder %v368_v5, 0.0  ;;  %v427_v18 = vand.u32 2147483648, %v368_v5 }
  0x94   :  { %1661 = vrsqrt.f32 %v362_v7  ;;  %vm410_vm3 = vcmp.eq.f32.partialorder %v362_v7, inf  ;;  %vm412_vm4 = vcmp.eq.f32.partialorder %v362_v7, 0.0  ;;  %v413_v19 = vand.u32 2147483648, %v362_v7 }
  0x96   :  { %v371_v10 = vpop.xlane.xlu1 %370  ;;  %v365_v11 = vpop.xlane.xlu0 %364 }
  0x97   :  { %1663 = vrsqrt.f32 %v371_v10  ;;  %vm431_vm5 = vcmp.eq.f32.partialorder %v371_v10, inf  ;;  %vm433_vm6 = vcmp.eq.f32.partialorder %v371_v10, 0.0  ;;  %v434_v25 = vand.u32 2147483648, %v371_v10 }
  0x98   :  { %1665 = vrsqrt.f32 %v365_v11  ;;  %vm417_vm7 = vcmp.eq.f32.partialorder %v365_v11, inf  ;;  %vm419_vm8 = vcmp.eq.f32.partialorder %v365_v11, 0.0  ;;  %v420_v32 = vand.u32 2147483648, %v365_v11 }
  0x9a   :  { %v2210_v12 = vpop.xlane.xlu1 %376  ;;  %v2212_v14 = vpop.xlane.xlu0 %373 }
  0x9b   :  { %1667 = vrsqrt.f32 %v2210_v12  ;;  %vm445_vm9 = vcmp.eq.f32.partialorder %v2210_v12, inf  ;;  %vm447_vm10 = vcmp.eq.f32.partialorder %v2210_v12, 0.0  ;;  %v448_v36 = vand.u32 2147483648, %v2210_v12 }
  0x9c   :  { %1669 = vrsqrt.f32 %v2212_v14  ;;  %vm438_vm11 = vcmp.eq.f32.partialorder %v2212_v14, inf  ;;  %vm440_vm12 = vcmp.eq.f32.partialorder %v2212_v14, 0.0  ;;  %v441_v44 = vand.u32 2147483648, %v2212_v14 }
  0x9d   :  { %v1660_v15 = vpop.eup %1659 }
  0x9e   :  { %v1662_v20 = vpop.eup %1661  ;;  %v423_v24 = vmul.f32 %v1660_v15, %v368_v5  ;;  %v2216_v26 = vpop.xlane.xlu0 %379 }
  0x9f   :  { %v2218_v27 = vpop.xlane.xlu1 %382  ;;  %v409_v29 = vmul.f32 %v1662_v20, %v362_v7  ;;  %1671 = vrsqrt.f32 %v2216_v26  ;;  %vm452_vm13 = vcmp.eq.f32.partialorder %v2216_v26, inf  ;;  %vm454_vm14 = vcmp.eq.f32.partialorder %v2216_v26, 0.0 }
  0xa0   :  { %v425_v31 = vsel %vm424_vm1, %v368_v5, %v423_v24  ;;  %1673 = vrsqrt.f32 %v2218_v27  ;;  %v455_v52 = vand.u32 2147483648, %v2216_v26  ;;  %vm459_vm15 = vcmp.eq.f32.partialorder %v2218_v27, inf }
  0xa1   :  { %v1664_v33 = vpop.eup %1663  ;;  %v428_v34 = vsel %vm426_vm2, %v427_v18, %v425_v31  ;;  %v411_v35 = vsel %vm410_vm3, %v362_v7, %v409_v29  ;;  %vm461_vm1 = vcmp.eq.f32.partialorder %v2218_v27, 0.0  ;;  %v462_v5 = vand.u32 2147483648, %v2218_v27 }
  0xa2   :  { %v1666_v37 = vpop.eup %1665  ;;  %v522_v38 = vmax.f32 %v428_v34, 1e-12  ;;  %v414_v39 = vsel %vm412_vm4, %v413_v19, %v411_v35  ;;  %v430_v40 = vmul.f32 %v1664_v33, %v371_v10  ;;  %v2230_v41 = vpop.xlane.xlu0 %385 }
  0xa3   :  { %v2232_v42 = vpop.xlane.xlu1 %388  ;;  %v416_v43 = vmul.f32 %v1666_v37, %v365_v11  ;;  %1675 = vrsqrt.f32 %v2230_v41  ;;  %v520_v45 = vmax.f32 %v414_v39, 1e-12  ;;  %vm466_vm2 = vcmp.eq.f32.partialorder %v2230_v41, inf }
  0xa4   :  { %v432_v48 = vsel %vm431_vm5, %v371_v10, %v430_v40  ;;  %1677 = vrcp.f32 %v522_v38  ;;  %vm468_vm3 = vcmp.eq.f32.partialorder %v2230_v41, 0.0  ;;  %v469_v29 = vand.u32 2147483648, %v2230_v41 }
  0xa5   :  { %v1668_v49 = vpop.eup %1667  ;;  %v435_v50 = vsel %vm433_vm6, %v434_v25, %v432_v48  ;;  %v418_v51 = vsel %vm417_vm7, %v365_v11, %v416_v43  ;;  %1679 = vrsqrt.f32 %v2232_v42  ;;  %vm473_vm4 = vcmp.eq.f32.partialorder %v2232_v42, inf }
  0xa6   :  { %v1670_v55 = vpop.eup %1669  ;;  %v421_v56 = vsel %vm419_vm8, %v420_v32, %v418_v51  ;;  %v444_v57 = vmul.f32 %v1668_v49, %v2210_v12  ;;  %v2246_v58 = vpop.xlane.xlu0 %391  ;;  %v523_v63 = vmax.f32 %v435_v50, 1e-12  ;;  %vm475_vm7 = vcmp.eq.f32.partialorder %v2232_v42, 0.0 }
  0xa7   :  { %v2249_v60 = vpop.xlane.xlu1 %394  ;;  %v521_v61 = vmax.f32 %v421_v56, 1e-12  ;;  %v437_v62 = vmul.f32 %v1670_v55, %v2212_v14  ;;  %1681 = vrsqrt.f32 %v2246_v58  ;;  %vm480_vm5 = vcmp.eq.f32.partialorder %v2246_v58, inf }
  0xa8   :  { %1683 = vrcp.f32 %v520_v45  ;;  %v446_v3 = vsel %vm445_vm9, %v2210_v12, %v444_v57  ;;  %vm482_vm6 = vcmp.eq.f32.partialorder %v2246_v58, 0.0  ;;  %v483_v37 = vand.u32 2147483648, %v2246_v58 }
  0xa9   :  { %v1672_v7 = vpop.eup %1671  ;;  %1685 = vrcp.f32 %v521_v61  ;;  %v449_v10 = vsel %vm447_vm10, %v448_v36, %v446_v3  ;;  %v439_v11 = vsel %vm438_vm11, %v2212_v14, %v437_v62  ;;  %vm487_vm11 = vcmp.eq.f32.partialorder %v2249_v60, inf }
  0xaa   :  { %v1674_v15 = vpop.eup %1673  ;;  %v525_v18 = vmax.f32 %v449_v10, 1e-12  ;;  %v442_v19 = vsel %vm440_vm12, %v441_v44, %v439_v11  ;;  %v451_v20 = vmul.f32 %v1672_v7, %v2216_v26  ;;  %v2268_v24 = vpop.xlane.xlu0 %397  ;;  %v490_v10 = vand.u32 2147483648, %v2249_v60 }
  0xab   :  { %v2270_v25 = vpop.xlane.xlu1 %400  ;;  %v458_v12 = vmul.f32 %v1674_v15, %v2218_v27  ;;  %1687 = vrsqrt.f32 %v2268_v24  ;;  %v524_v32 = vmax.f32 %v442_v19, 1e-12  ;;  %vm494_vm8 = vcmp.eq.f32.partialorder %v2268_v24, inf }
  0xac   :  { %1689 = vrcp.f32 %v523_v63  ;;  %v453_v14 = vsel %vm452_vm13, %v2216_v26, %v451_v20  ;;  %v476_v26 = vand.u32 2147483648, %v2232_v42  ;;  %vm496_vm9 = vcmp.eq.f32.partialorder %v2268_v24, 0.0 }
  0xad   :  { %v1676_v31 = vpop.eup %1675  ;;  %1691 = vrcp.f32 %v525_v18  ;;  %v456_v33 = vsel %vm454_vm14, %v455_v52, %v453_v14  ;;  %v460_v34 = vsel %vm459_vm15, %v2218_v27, %v458_v12  ;;  %v497_v45 = vand.u32 2147483648, %v2268_v24 }
  0xae   :  { %v463_v35 = vsel %vm461_vm1, %v462_v5, %v460_v34  ;;  %v465_v36 = vmul.f32 %v1676_v31, %v2230_v41  ;;  %v2290_v38 = vpop.xlane.xlu0 %403  ;;  %1693 = vrsqrt.f32 %v2249_v60  ;;  %v1678_v40 = vpop.eup %1677  ;;  %v526_v43 = vmax.f32 %v456_v33, 1e-12 }
  0xaf   :  { %v2293_v39 = vpop.xlane.xlu1 %406  ;;  %1695 = vrsqrt.f32 %v2290_v38  ;;  %v1680_v27 = vpop.eup %1679  ;;  %v527_v49 = vmax.f32 %v463_v35, 1e-12  ;;  %vm508_vm10 = vcmp.eq.f32.partialorder %v2290_v38, inf  ;;  %vm510_vm12 = vcmp.eq.f32.partialorder %v2290_v38, 0.0 }
  0xb0   :  { %v467_v44 = vsel %vm466_vm2, %v2230_v41, %v465_v36  ;;  %1697 = vrcp.f32 %v524_v32  ;;  %v472_v51 = vmul.f32 %v1680_v27, %v2232_v42  ;;  %v511_v63 = vand.u32 2147483648, %v2290_v38  ;;  %vm2343_vm2 = vmpackc.low %vm53_vm0, %vm53_vm0 }
  0xb1   :  { %v1682_v48 = vpop.eup %1681  ;;  %v470_v50 = vsel %vm468_vm3, %v469_v29, %v467_v44  ;;  %1699 = vrsqrt.f32 %v2270_v25  ;;  %vm489_vm13 = vcmp.eq.f32.partialorder %v2249_v60, 0.0  ;;  %vm501_vm14 = vcmp.eq.f32.partialorder %v2270_v25, inf }
  0xb2   :  { %v1684_v52 = vpop.eup %1683  ;;  %v479_v55 = vmul.f32 %v1682_v48, %v2246_v58  ;;  %v2310_v56 = vpop.xlane.xlu0 %55  ;;  %v528_v61 = vmax.f32 %v470_v50, 1e-12  ;;  %v474_v41 = vsel %vm473_vm4, %v2232_v42, %v472_v51  ;;  %vm503_vm3 = vcmp.eq.f32.partialorder %v2270_v25, 0.0 }
  0xb3   :  { %v1686_v57 = vpop.eup %1685  ;;  %1701 = vrsqrt.f32 %v2310_v56  ;;  %v2323_v3 = vpop.xlane.xlu1 %79  ;;  %v477_v7 = vsel %vm475_vm7, %v476_v26, %v474_v41  ;;  %vm104_vm15 = vcmp.eq.f32.partialorder %v2310_v56, inf  ;;  %v537_v19 = vmul.f32 %v1684_v52, %v1962_v1 }
  0xb4   :  { %1703 = vrcp.f32 %v526_v43  ;;  %v481_v62 = vsel %vm480_vm5, %v2246_v58, %v479_v55  ;;  %v539_v20 = vmul.f32 %v1686_v57, %v1978_v6  ;;  %vm106_vm1 = vcmp.eq.f32.partialorder %v2310_v56, 0.0 }
  0xb5   :  { %v1688_v5 = vpop.eup %1687  ;;  %1705 = vrcp.f32 %v527_v49  ;;  %v484_v42 = vsel %vm482_vm6, %v483_v37, %v481_v62  ;;  %v107_v29 = vand.u32 2147483648, %v2310_v56  ;;  %v529_v1 = vmax.f32 %v477_v7, 1e-12 }
  0xb6   :  { %v1690_v11 = vpop.eup %1689  ;;  %v493_v15 = vmul.f32 %v1688_v5, %v2268_v24  ;;  %v2331_v18 = vpop.xlane.xlu0 %58  ;;  %1707 = vrcp.f32 %v528_v61  ;;  %v1591_v32 = vpack.c.bf16 %v539_v20, %v537_v19  ;;  %v541_v58 = vmul.f32 %v1678_v40, %v1957_v0 }
  0xb7   :  { %v2335_v12 = vpop.eup %1691  ;;  %1709 = vrsqrt.f32 %v2331_v18  ;;  %v543_v36 = vmul.f32 %v1690_v11, %v1967_v2  ;;  %v530_v37 = vmax.f32 %v484_v42, 1e-12  ;;  %v504_v49 = vand.u32 2147483648, %v2270_v25 }
  0xb8   :  { %v1694_v31 = vpop.eup %1693  ;;  %v495_v6 = vsel %vm494_vm8, %v2268_v24, %v493_v15  ;;  %1593 = vmatprep.subr.msk.bf16.mxu0 %vm2343_vm2, %v1591_v32  ;;  %1639 = vmatprep.subr.msk.bf16.mxu1 %vm2343_vm2, %v1591_v32  ;;  %1711 = vrsqrt.f32 %v2293_v39  ;;  %v2365_v24 = vpop.xlane.xlu1 %82  ;;  %vm111_vm4 = vcmp.eq.f32.partialorder %v2331_v18, inf  ;;  %vm113_vm5 = vcmp.eq.f32.partialorder %v2331_v18, 0.0 }
  0xb9   :  { %v1696_v33 = vpop.eup %1695  ;;  %v498_v34 = vsel %vm496_vm9, %v497_v45, %v495_v6  ;;  %v486_v35 = vmul.f32 %v1694_v31, %v2249_v60  ;;  %1596 = vmatpush3.bf16.xpose.msk.msra.mxu0 %vm2343_vm2, %v1591_v32  ;;  %1647 = vmatpush3.bf16.xpose.msk.msra.mxu1 %vm2343_vm2, %v1591_v32  ;;  %v1597_v43 = vpack.c.bf16 %v543_v36, %v541_v58  ;;  %vm515_vm6 = vcmp.eq.f32.partialorder %v2293_v39, inf }
  0xba   :  { %v507_v26 = vmul.f32 %v1696_v33, %v2290_v38  ;;  %v2362_v0 = vpop.xlane.xlu0 %61  ;;  %v1698_v40 = vpop.eup %1697  ;;  %v532_v27 = vmax.f32 %v498_v34, 1e-12  ;;  %vm517_vm9 = vcmp.eq.f32.partialorder %v2293_v39, 0.0  ;;  %v518_v42 = vand.u32 2147483648, %v2293_v39 }
  0xbb   :  { %v488_v2 = vsel %vm487_vm11, %v2249_v60, %v486_v35  ;;  %1713 = vrsqrt.f32 %v2362_v0  ;;  %v1700_v44 = vpop.eup %1699  ;;  %1599 = vmatprep.subr.msk.bf16.mxu0 %vm2343_vm2, %v1597_v43  ;;  %1640 = vmatprep.subr.msk.bf16.mxu1 %vm2343_vm2, %v1597_v43  ;;  %vm118_vm7 = vcmp.eq.f32.partialorder %v2362_v0, inf  ;;  %vm120_vm8 = vcmp.eq.f32.partialorder %v2362_v0, 0.0 }
  0xbc   :  { %1715 = vrcp.f32 %v529_v1  ;;  %v509_v45 = vsel %vm508_vm10, %v2290_v38, %v507_v26  ;;  %v491_v48 = vsel %vm489_vm13, %v490_v10, %v488_v2  ;;  %v500_v55 = vmul.f32 %v1700_v44, %v2270_v25  ;;  %v2407_v7 = vpop.xlane.xlu1 %85 }
  0xbd   :  { %v1702_v50 = vpop.eup %1701  ;;  %v512_v51 = vsel %vm510_vm12, %v511_v63, %v509_v45  ;;  %v531_v52 = vmax.f32 %v491_v48, 1e-12  ;;  %1717 = vrcp.f32 %v530_v37  ;;  %v114_v38 = vand.u32 2147483648, %v2331_v18 }
  0xbe   :  { %v2389_v57 = vpop.eup %1703  ;;  %v103_v60 = vmul.f32 %v1702_v50, %v2310_v56  ;;  %v2394_v61 = vpop.xlane.xlu0 %64  ;;  %1719 = vrcp.f32 %v532_v27  ;;  %v534_v62 = vmax.f32 %v512_v51, 1e-12  ;;  %v502_v63 = vsel %vm501_vm14, %v2270_v25, %v500_v55 }
  0xbf   :  { %v2396_v41 = vpop.eup %1705  ;;  %1721 = vrcp.f32 %v531_v52  ;;  %v505_v15 = vsel %vm503_vm3, %v504_v49, %v502_v63  ;;  %v121_v19 = vand.u32 2147483648, %v2362_v0  ;;  %vm125_vm10 = vcmp.eq.f32.partialorder %v2394_v61, inf }
  0xc0   :  { %v105_v5 = vsel %vm104_vm15, %v2310_v56, %v103_v60  ;;  %v2409_v10 = vpop.eup %1707  ;;  %1723 = vrsqrt.f32 %v2394_v61  ;;  %v545_v25 = vmul.f32 %v1698_v40, %v1990_v9  ;;  %v547_v56 = vmul.f32 %v2335_v12, %v1985_v8  ;;  %v2446_v37 = vpop.xlane.xlu1 %88 }
  0xc1   :  { %v108_v11 = vsel %vm106_vm1, %v107_v29, %v105_v5  ;;  %1725 = vrsqrt.f32 %v2323_v3  ;;  %v1710_v1 = vpop.eup %1709  ;;  %1602 = vmatpush3.bf16.xpose.msk.msra.mxu0 %vm2343_vm2, %v1597_v43  ;;  %1648 = vmatpush3.bf16.xpose.msk.msra.mxu1 %vm2343_vm2, %v1597_v43  ;;  %v533_v32 = vmax.f32 %v505_v15, 1e-12  ;;  %vm127_vm11 = vcmp.eq.f32.partialorder %v2394_v61, 0.0 }
  0xc2   :  { %v214_v20 = vmax.f32 %v108_v11, 1e-12  ;;  %v2420_v31 = vpop.xlane.xlu0 %67  ;;  %1727 = vrcp.f32 %v534_v62  ;;  %v1712_v29 = vpop.eup %1711  ;;  %v110_v6 = vmul.f32 %v1710_v1, %v2331_v18  ;;  %v128_v58 = vand.u32 2147483648, %v2394_v61 }
  0xc3   :  { %v514_v34 = vmul.f32 %v1712_v29, %v2293_v39  ;;  %vm160_vm12 = vcmp.eq.f32.partialorder %v2323_v3, inf  ;;  %v1603_v35 = vpack.c.bf16 %v547_v56, %v545_v25  ;;  %vm162_vm13 = vcmp.eq.f32.partialorder %v2323_v3, 0.0 }
  0xc4   :  { %1729 = vrcp.f32 %v214_v20  ;;  %v112_v8 = vsel %vm111_vm4, %v2331_v18, %v110_v6  ;;  %v163_v27 = vand.u32 2147483648, %v2323_v3  ;;  %vm132_vm14 = vcmp.eq.f32.partialorder %v2420_v31, inf  ;;  %v2490_v5 = vpop.xlane.xlu1 %91 }
  0xc5   :  { %v1714_v33 = vpop.eup %1713  ;;  %1731 = vrsqrt.f32 %v2420_v31  ;;  %v115_v26 = vsel %vm113_vm5, %v114_v38, %v112_v8  ;;  %v516_v40 = vsel %vm515_vm6, %v2293_v39, %v514_v34  ;;  %1605 = vmatprep.subr.msk.bf16.mxu0 %vm2343_vm2, %v1603_v35  ;;  %1641 = vmatprep.subr.msk.bf16.mxu1 %vm2343_vm2, %v1603_v35  ;;  %vm134_vm15 = vcmp.eq.f32.partialorder %v2420_v31, 0.0 }
  0xc6   :  { %v2436_v9 = vpop.eup %1715  ;;  %v117_v12 = vmul.f32 %v1714_v33, %v2362_v0  ;;  %1733 = vrsqrt.f32 %v2365_v24  ;;  %v2444_v36 = vpop.xlane.xlu0 %70  ;;  %v215_v43 = vmax.f32 %v115_v26, 1e-12  ;;  %v519_v44 = vsel %vm517_vm9, %v518_v42, %v516_v40 }
  0xc7   :  { %1735 = vrsqrt.f32 %v2444_v36  ;;  %v2459_v2 = vpop.eup %1717  ;;  %v535_v49 = vmax.f32 %v519_v44, 1e-12  ;;  %v135_v52 = vand.u32 2147483648, %v2420_v31  ;;  %vm167_vm1 = vcmp.eq.f32.partialorder %v2365_v24, inf }
  0xc8   :  { %1737 = vrcp.f32 %v533_v32  ;;  %v119_v18 = vsel %vm118_vm7, %v2362_v0, %v117_v12  ;;  %v2466_v45 = vpop.eup %1719  ;;  %vm169_vm3 = vcmp.eq.f32.partialorder %v2365_v24, 0.0  ;;  %v549_v0 = vmul.f32 %v2389_v57, %v2003_v16  ;;  %v2533_v12 = vpop.xlane.xlu1 %94 }
  0xc9   :  { %v122_v48 = vsel %vm120_vm8, %v121_v19, %v119_v18  ;;  %v2472_v50 = vpop.eup %1721  ;;  %1739 = vrcp.f32 %v215_v43  ;;  %1608 = vmatpush3.bf16.xpose.msk.msra.mxu0 %vm2343_vm2, %v1603_v35  ;;  %1649 = vmatpush3.bf16.xpose.msk.msra.mxu1 %vm2343_vm2, %v1603_v35  ;;  %v551_v60 = vmul.f32 %v2396_v41, %v2008_v17  ;;  %v170_v63 = vand.u32 2147483648, %v2365_v24 }
  0xca   :  { %v216_v51 = vmax.f32 %v122_v48, 1e-12  ;;  %v2476_v39 = vpop.xlane.xlu0 %73  ;;  %v1724_v55 = vpop.eup %1723  ;;  %1741 = vrcp.f32 %v535_v49  ;;  %vm139_vm4 = vcmp.eq.f32.partialorder %v2444_v36, inf  ;;  %vm141_vm5 = vcmp.eq.f32.partialorder %v2444_v36, 0.0 }
  0xcb   :  { %v1726_v38 = vpop.eup %1725  ;;  %v124_v62 = vmul.f32 %v1724_v55, %v2394_v61  ;;  %v1609_v16 = vpack.c.bf16 %v551_v60, %v549_v0  ;;  %v142_v41 = vand.u32 2147483648, %v2444_v36  ;;  %v177_v19 = vand.u32 2147483648, %v2407_v7 }
  0xcc   :  { %1743 = vrcp.f32 %v216_v51  ;;  %v2492_v11 = vpop.eup %1727  ;;  %v159_v15 = vmul.f32 %v1726_v38, %v2323_v3  ;;  %vm174_vm6 = vcmp.eq.f32.partialorder %v2407_v7, inf  ;;  %vm176_vm7 = vcmp.eq.f32.partialorder %v2407_v7, 0.0 }
  0xcd   :  { %1745 = vrsqrt.f32 %v2407_v7  ;;  %v126_v57 = vsel %vm125_vm10, %v2394_v61, %v124_v62  ;;  %1611 = vmatprep.subr.msk.bf16.mxu0 %vm2343_vm2, %v1609_v16  ;;  %1642 = vmatprep.subr.msk.bf16.mxu1 %vm2343_vm2, %v1609_v16  ;;  %vm146_vm8 = vcmp.eq.f32.partialorder %v2476_v39, inf  ;;  %vm148_vm9 = vcmp.eq.f32.partialorder %v2476_v39, 0.0 }
  0xce   :  { %v1730_v17 = vpop.eup %1729  ;;  %1747 = vrsqrt.f32 %v2476_v39  ;;  %v2503_v20 = vpop.xlane.xlu0 %76  ;;  %v129_v25 = vsel %vm127_vm11, %v128_v58, %v126_v57  ;;  %v161_v56 = vsel %vm160_vm12, %v2323_v3, %v159_v15  ;;  %v149_v8 = vand.u32 2147483648, %v2476_v39 }
  0xcf   :  { %v1732_v42 = vpop.eup %1731  ;;  %v231_v1 = vmul.f32 %v1730_v17, %v2063_v46  ;;  %1749 = vrsqrt.f32 %v2446_v37  ;;  %v217_v6 = vmax.f32 %v129_v25, 1e-12  ;;  %v164_v46 = vsel %vm162_vm13, %v163_v27, %v161_v56  ;;  %v2568_v15 = vpop.xlane.xlu1 %97 }
  0xd0   :  { %v1734_v29 = vpop.eup %1733  ;;  %v131_v61 = vmul.f32 %v1732_v42, %v2420_v31  ;;  %v222_v58 = vmax.f32 %v164_v46, 1e-12  ;;  %1751 = vrsqrt.f32 %v2503_v20  ;;  %vm181_vm10 = vcmp.eq.f32.partialorder %v2446_v37, inf }
  0xd1   :  { %v1736_v32 = vpop.eup %1735  ;;  %262 = vst.msk [vmem:[#allocation2] sm:$0xff] %vm53_vm0, %v231_v1  ;;  %v166_v33 = vmul.f32 %v1734_v29, %v2365_v24  ;;  %1753 = vrcp.f32 %v217_v6  ;;  %1614 = vmatpush3.bf16.xpose.msk.msra.mxu0 %vm2343_vm2, %v1609_v16  ;;  %1650 = vmatpush3.bf16.xpose.msk.msra.mxu1 %vm2343_vm2, %v1609_v16  ;;  %vm183_vm11 = vcmp.eq.f32.partialorder %v2446_v37, 0.0  ;;  %v184_v55 = vand.u32 2147483648, %v2446_v37 }
  0xd2   :  { %v2526_v34 = vpop.eup %1737  ;;  %v133_v3 = vsel %vm132_vm14, %v2420_v31, %v131_v61  ;;  %v138_v35 = vmul.f32 %v1736_v32, %v2444_v36  ;;  %1755 = vrcp.f32 %v222_v58  ;;  %vm153_vm12 = vcmp.eq.f32.partialorder %v2503_v20, inf }
  0xd3   :  { %v136_v26 = vsel %vm134_vm15, %v135_v52, %v133_v3  ;;  %v168_v40 = vsel %vm167_vm1, %v2365_v24, %v166_v33  ;;  %v1740_v27 = vpop.eup %1739  ;;  %1757 = vrsqrt.f32 %v2490_v5  ;;  %vm155_vm13 = vcmp.eq.f32.partialorder %v2503_v20, 0.0 }
  0xd4   :  { %v218_v43 = vmax.f32 %v136_v26, 1e-12  ;;  %v171_v18 = vsel %vm169_vm3, %v170_v63, %v168_v40  ;;  %v140_v31 = vsel %vm139_vm4, %v2444_v36, %v138_v35  ;;  %v2551_v44 = vpop.eup %1741  ;;  %v233_v48 = vmul.f32 %v1740_v27, %v2079_v53  ;;  %v2617_v35 = vpop.xlane.xlu1 %100 }
  0xd5   :  { %v223_v49 = vmax.f32 %v171_v18, 1e-12  ;;  %v143_v51 = vsel %vm141_vm5, %v142_v41, %v140_v31  ;;  %v553_v53 = vmul.f32 %v2409_v10, %v2019_v22  ;;  %v555_v36 = vmul.f32 %v2436_v9, %v2024_v23 }
  0xd6   :  { %v1744_v52 = vpop.eup %1743  ;;  %1759 = vrcp.f32 %v218_v43  ;;  %v219_v24 = vmax.f32 %v143_v51, 1e-12  ;;  %263 = vst.msk [vmem:[#allocation2 + $0x8] sm:$0xff] %vm53_vm0, %v233_v48  ;;  %v156_v63 = vand.u32 2147483648, %v2503_v20  ;;  %vm188_vm14 = vcmp.eq.f32.partialorder %v2490_v5, inf }
  0xd7   :  { %v1746_v0 = vpop.eup %1745  ;;  %v235_v60 = vmul.f32 %v1744_v52, %v2095_v59  ;;  %1761 = vrcp.f32 %v223_v49  ;;  %v1615_v23 = vpack.c.bf16 %v555_v36, %v553_v53  ;;  %vm190_vm15 = vcmp.eq.f32.partialorder %v2490_v5, 0.0  ;;  %v1917_v52 = vld [vmem:[%s3037_s1 + $0x68] sm:$0xff] }
  0xd8   :  { %v1748_v38 = vpop.eup %1747  ;;  %1763 = vrcp.f32 %v219_v24  ;;  %v173_v62 = vmul.f32 %v1746_v0, %v2407_v7  ;;  %v2570_v16 = vld [vmem:[#allocation2] sm:$0xff]  ;;  %v191_v42 = vand.u32 2147483648, %v2490_v5  ;;  %vm195_vm1 = vcmp.eq.f32.partialorder %v2533_v12, inf }
  0xd9   :  { %v1750_v59 = vpop.eup %1749  ;;  %264 = vst.msk [vmem:[#allocation2 + $0x10] sm:$0xff] %vm53_vm0, %v235_v60  ;;  %v145_v22 = vmul.f32 %v1748_v38, %v2476_v39  ;;  %1765 = vrsqrt.f32 %v2533_v12  ;;  %1567 = vmatprep.mubr.msk.f32.mxu0 %vm53_vm0, %v2570_v16  ;;  %1617 = vmatprep.subr.msk.bf16.mxu0 %vm2343_vm2, %v1615_v23  ;;  %vm197_vm3 = vcmp.eq.f32.partialorder %v2533_v12, 0.0  ;;  %v557_v61 = vmul.f32 %v2459_v2, %v2035_v28  ;;  %v1915_v28 = vld [vmem:[%s3037_s1 + $0x58] sm:$0xff]  ;;  %v1918_v38 = vld [vmem:[%s3037_s1 + $0x70] sm:$0xff] }
  0xda   :  { %v175_v10 = vsel %vm174_vm6, %v2407_v7, %v173_v62  ;;  %v180_v9 = vmul.f32 %v1750_v59, %v2446_v37  ;;  %1767 = vrsqrt.f32 %v2568_v15  ;;  %v1752_v17 = vpop.eup %1751  ;;  %1643 = vmatprep.subr.msk.bf16.mxu1 %vm2343_vm2, %v1615_v23  ;;  %1620 = vmatpush3.bf16.xpose.msk.msra.mxu0 %vm2343_vm2, %v1615_v23  ;;  %v198_v26 = vand.u32 2147483648, %v2533_v12  ;;  %v1919_v59 = vld [vmem:[%s3037_s1 + $0x78] sm:$0xff] }
  0xdb   :  { %v178_v57 = vsel %vm176_vm7, %v177_v19, %v175_v10  ;;  %v147_v41 = vsel %vm146_vm8, %v2476_v39, %v145_v22  ;;  %v1754_v1 = vpop.eup %1753  ;;  %v152_v56 = vmul.f32 %v1752_v17, %v2503_v20  ;;  %1651 = vmatpush3.bf16.xpose.msk.msra.mxu1 %vm2343_vm2, %v1615_v23  ;;  %vm202_vm4 = vcmp.eq.f32.partialorder %v2568_v15, inf }
  0xdc   :  { %v224_v25 = vmax.f32 %v178_v57, 1e-12  ;;  %v150_v7 = vsel %vm148_vm9, %v149_v8, %v147_v41  ;;  %v182_v19 = vsel %vm181_vm10, %v2446_v37, %v180_v9  ;;  %v1756_v29 = vpop.eup %1755  ;;  %v237_v6 = vmul.f32 %v1754_v1, %v2107_v4  ;;  %v1920_v1 = vld [vmem:[%s3038_s0 + $0x50] sm:$0xff] }
  0xdd   :  { %v220_v46 = vmax.f32 %v150_v7, 1e-12  ;;  %v185_v39 = vsel %vm183_vm11, %v184_v55, %v182_v19  ;;  %v1758_v32 = vpop.eup %1757  ;;  %v247_v58 = vmul.f32 %v1756_v29, %v2068_v47  ;;  %v154_v3 = vsel %vm153_vm12, %v2503_v20, %v152_v56 }
  0xde   :  { %1769 = vrcp.f32 %v224_v25  ;;  %v225_v33 = vmax.f32 %v185_v39, 1e-12  ;;  %265 = vst.msk [vmem:[#allocation2 + $0x18] sm:$0xff] %vm53_vm0, %v237_v6  ;;  %v157_v4 = vsel %vm155_vm13, %v156_v63, %v154_v3  ;;  %v187_v37 = vmul.f32 %v1758_v32, %v2490_v5  ;;  %v1921_v32 = vld [vmem:[%s3038_s0 + $0x58] sm:$0xff] }
  0xdf   :  { %1771 = vrcp.f32 %v220_v46  ;;  %v559_v47 = vmul.f32 %v1915_v28, %v2472_v50  ;;  %270 = vst.msk [vmem:[#allocation2 + $0x40] sm:$0xff] %vm53_vm0, %v247_v58  ;;  %v221_v8 = vmax.f32 %v157_v4, 1e-12  ;;  %v2635_v50 = vld [vmem:[#allocation2 + $0x8] sm:$0xff]  ;;  %vm204_vm5 = vcmp.eq.f32.partialorder %v2568_v15, 0.0  ;;  %v1922_v28 = vld [vmem:[%s3038_s0 + $0x38] sm:$0xff] }
  0xe0   :  { %v1760_v2 = vpop.eup %1759  ;;  %1773 = vrcp.f32 %v225_v33  ;;  %v189_v27 = vsel %vm188_vm14, %v2490_v5, %v187_v37  ;;  %v563_v24 = vmul.f32 %v1917_v52, %v2526_v34  ;;  %v205_v0 = vand.u32 2147483648, %v2568_v15  ;;  %v2666_v34 = vld [vmem:[#allocation2 + $0x10] sm:$0xff] }
  0xe1   :  { %v1762_v40 = vpop.eup %1761  ;;  %v239_v20 = vmul.f32 %v1760_v2, %v2119_v13  ;;  %v1621_v43 = vpack.c.bf16 %v559_v47, %v557_v61  ;;  %1775 = vrsqrt.f32 %v2617_v35  ;;  %v192_v48 = vsel %vm190_vm15, %v191_v42, %v189_v27 }
  0xe2   :  { %v1764_v18 = vpop.eup %1763  ;;  %v249_v31 = vmul.f32 %v1762_v40, %v2084_v54  ;;  %1777 = vrcp.f32 %v221_v8  ;;  %v226_v51 = vmax.f32 %v192_v48, 1e-12  ;;  %v1916_v54 = vld [vmem:[%s3037_s1 + $0x60] sm:$0xff]  ;;  %v1163_v60 = vmul.f32 %v2635_v50, %v2635_v50 }
  0xe3   :  { %v1766_v49 = vpop.eup %1765  ;;  %266 = vst.msk [vmem:[#allocation2 + $0x20] sm:$0xff] %vm53_vm0, %v239_v20  ;;  %v241_v13 = vmul.f32 %v1764_v18, %v2131_v21  ;;  %1623 = vmatprep.subr.msk.bf16.mxu0 %vm2343_vm2, %v1621_v43  ;;  %1644 = vmatprep.subr.msk.bf16.mxu1 %vm2343_vm2, %v1621_v43  ;;  %v561_v5 = vmul.f32 %v1916_v54, %v2466_v45  ;;  %vm209_vm6 = vcmp.eq.f32.partialorder %v2617_v35, inf  ;;  %v212_v19 = vand.u32 2147483648, %v2617_v35 }
  0xe4   :  { %v1768_v21 = vpop.eup %1767  ;;  %271 = vst.msk [vmem:[#allocation2 + $0x48] sm:$0xff] %vm53_vm0, %v249_v31  ;;  %v194_v55 = vmul.f32 %v1766_v49, %v2533_v12  ;;  %1626 = vmatpush3.bf16.xpose.msk.msra.mxu0 %vm2343_vm2, %v1621_v43  ;;  %1652 = vmatpush3.bf16.xpose.msk.msra.mxu1 %vm2343_vm2, %v1621_v43  ;;  %v1162_v45 = vmul.f32 %v2570_v16, %v2570_v16  ;;  %1779 = vrcp.f32 %v226_v51  ;;  %v1181_v16 = vsel %vm53_vm0, %v1163_v60, 0.0  ;;  %v1923_v43 = vld [vmem:[%s3038_s0 + $0x60] sm:$0xff]  ;;  %v1924_v51 = vld [vmem:[%s3038_s0 + $0x68] sm:$0xff] }
  0xe5   :  { %267 = vst.msk [vmem:[#allocation2 + $0x28] sm:$0xff] %vm53_vm0, %v241_v13  ;;  %v201_v53 = vmul.f32 %v1768_v21, %v2568_v15  ;;  %v1627_v36 = vpack.c.bf16 %v563_v24, %v561_v5  ;;  %v565_v62 = vmul.f32 %v1918_v38, %v2492_v11  ;;  %v567_v22 = vmul.f32 %v1919_v59, %v2551_v44  ;;  %v2683_v10 = vld [vmem:[#allocation2 + $0x18] sm:$0xff]  ;;  %v1925_v5 = vld [vmem:[%s3038_s0 + $0x70] sm:$0xff] }
  0xe6   :  { %v196_v63 = vsel %vm195_vm1, %v2533_v12, %v194_v55  ;;  %v1178_v23 = vsel %vm53_vm0, %v1162_v45, 0.0  ;;  %v2694_v17 = vld [vmem:[#allocation2 + $0x40] sm:$0xff]  ;;  %v1164_v44 = vmul.f32 %v2666_v34, %v2666_v34  ;;  %1182 = vadd.xlane.f32.xlu0 %v1181_v16  ;;  %vm211_vm7 = vcmp.eq.f32.partialorder %v2617_v35, 0.0  ;;  %v1926_v59 = vld [vmem:[%s3038_s0 + $0x78] sm:$0xff] }
  0xe7   :  { %v199_v9 = vsel %vm197_vm3, %v198_v26, %v196_v63  ;;  %v203_v11 = vsel %vm202_vm4, %v2568_v15, %v201_v53  ;;  %1629 = vmatprep.subr.msk.bf16.mxu0 %vm2343_vm2, %v1627_v36  ;;  %1645 = vmatprep.subr.msk.bf16.mxu1 %vm2343_vm2, %v1627_v36  ;;  %v1165_v15 = vmul.f32 %v2683_v10, %v2683_v10 }
  0xe8   :  { %v1770_v57 = vpop.eup %1769  ;;  %v227_v41 = vmax.f32 %v199_v9, 1e-12  ;;  %v206_v12 = vsel %vm204_vm5, %v205_v0, %v203_v11  ;;  %1179 = vadd.xlane.f32.xlu1 %v1178_v23  ;;  %1579 = vmatprep.mubr.msk.f32.mxu1 %vm53_vm0, %v2694_v17  ;;  %v1633_v6 = vpack.c.bf16 %v567_v22, %v565_v62  ;;  %v1184_v46 = vsel %vm53_vm0, %v1164_v44, 0.0 }
  0xe9   :  { %v1772_v42 = vpop.eup %1771  ;;  %v251_v25 = vmul.f32 %v1920_v1, %v1770_v57  ;;  %v228_v7 = vmax.f32 %v206_v12, 1e-12  ;;  %v1187_v33 = vsel %vm53_vm0, %v1165_v15, 0.0  ;;  %v1170_v14 = vmul.f32 %v2694_v17, %v2694_v17  ;;  %v2828_v15 = vpop.permute.xlu1 %918 }
  0xea   :  { %v1774_v56 = vpop.eup %1773  ;;  %v243_v29 = vmul.f32 %v1772_v42, %v2143_v30  ;;  %1781 = vrcp.f32 %v227_v41  ;;  %v2711_v39 = vld [vmem:[#allocation2 + $0x20] sm:$0xff]  ;;  %1185 = vadd.xlane.f32.xlu0 %v1184_v46 }
  0xeb   :  { %v1776_v61 = vpop.eup %1775  ;;  %272 = vst.msk [vmem:[#allocation2 + $0x50] sm:$0xff] %vm53_vm0, %v251_v25  ;;  %v253_v58 = vmul.f32 %v1921_v32, %v1774_v56  ;;  %1783 = vrcp.f32 %v228_v7  ;;  %v1166_v30 = vmul.f32 %v2711_v39, %v2711_v39  ;;  %v320_v21 = vld [vmem:[#allocation2 + $0x48] sm:$0xff]  ;;  %v1202_v62 = vsel %vm53_vm0, %v1170_v14, 0.0 }
  0xec   :  { %v1778_v3 = vpop.eup %1777  ;;  %268 = vst.msk [vmem:[#allocation2 + $0x30] sm:$0xff] %vm53_vm0, %v243_v29  ;;  %v208_v4 = vmul.f32 %v1776_v61, %v2617_v35  ;;  %1632 = vmatpush3.bf16.xpose.msk.msra.mxu0 %vm2343_vm2, %v1627_v36  ;;  %1653 = vmatpush3.bf16.xpose.msk.msra.mxu1 %vm2343_vm2, %v1627_v36  ;;  %v2727_v37 = vld [vmem:[#allocation2 + $0x28] sm:$0xff]  ;;  %v1171_v53 = vmul.f32 %v320_v21, %v320_v21 }
  0xed   :  { %273 = vst.msk [vmem:[#allocation2 + $0x58] sm:$0xff] %vm53_vm0, %v253_v58  ;;  %v245_v47 = vmul.f32 %v1922_v28, %v1778_v3  ;;  %1635 = vmatprep.subr.msk.bf16.mxu0 %vm2343_vm2, %v1633_v6  ;;  %1646 = vmatprep.subr.msk.bf16.mxu1 %vm2343_vm2, %v1633_v6  ;;  %v1167_v2 = vmul.f32 %v2727_v37, %v2727_v37  ;;  %v1190_v20 = vsel %vm53_vm0, %v1166_v30, 0.0  ;;  %v2830_v56 = vpop.permute.xlu1 %921 }
  0xee   :  { %v210_v8 = vsel %vm209_vm6, %v2617_v35, %v208_v4  ;;  %1188 = vadd.xlane.f32.xlu1 %v1187_v33  ;;  %v1780_v26 = vpop.eup %1779  ;;  %1191 = vadd.xlane.f32.xlu0 %v1190_v20  ;;  %v1205_v23 = vsel %vm53_vm0, %v1171_v53, 0.0 }
  0xef   :  { %269 = vst.msk [vmem:[#allocation2 + $0x38] sm:$0xff] %vm53_vm0, %v245_v47  ;;  %v213_v40 = vsel %vm211_vm7, %v212_v19, %v210_v8  ;;  %v1193_v27 = vsel %vm53_vm0, %v1167_v2, 0.0  ;;  %v255_v18 = vmul.f32 %v1923_v43, %v1780_v26  ;;  %v1928_v19 = vmov 0.0  }
  0xf0   :  { %v229_v31 = vmax.f32 %v213_v40, 1e-12 }
  0xf1   :  { %274 = vst.msk [vmem:[#allocation2 + $0x60] sm:$0xff] %vm53_vm0, %v255_v18  ;;  %v2832_v29 = vpop.permute.xlu1 %924 }
  0xf2   :  { %1785 = vrcp.f32 %v229_v31  ;;  %1194 = vadd.xlane.f32.xlu1 %v1193_v27  ;;  %v321_v0 = vld [vmem:[#allocation2 + $0x50] sm:$0xff]  ;;  %v874_v31 = vlaneseq }
  0xf3   :  { %v317_v35 = vld [vmem:[#allocation2 + $0x30] sm:$0xff]  ;;  %v1172_v36 = vmul.f32 %v321_v0, %v321_v0 }
  0xf4   :  { %v1782_v48 = vpop.eup %1781  ;;  %1638 = vmatpush3.bf16.xpose.msk.msra.mxu0 %vm2343_vm2, %v1633_v6  ;;  %1654 = vmatpush3.bf16.xpose.msk.msra.mxu1 %vm2343_vm2, %v1633_v6  ;;  %v1168_v49 = vmul.f32 %v317_v35, %v317_v35  ;;  %v322_v38 = vld [vmem:[#allocation2 + $0x58] sm:$0xff]  ;;  %vm278_vm2 = vcmask 7168  }
  0xf5   :  { %v1784_v13 = vpop.eup %1783  ;;  %v257_v54 = vmul.f32 %v1924_v51, %v1782_v48  ;;  %v1173_v63 = vmul.f32 %v322_v38, %v322_v38  ;;  %280 = vst.msk [vmem:[#allocation3 + $0x8] sm:$0xff] %vm278_vm2, %v1928_v19  ;;  %279 = vst.msk [vmem:[#allocation3] sm:$0xff] %vm278_vm2, %v1928_v19  ;;  %v2834_v8 = vpop.permute.xlu1 %927 }
  0xf6   :  { %v259_v52 = vmul.f32 %v1925_v5, %v1784_v13  ;;  %v1196_v24 = vsel %vm53_vm0, %v1168_v49, 0.0  ;;  %v318_v55 = vld [vmem:[#allocation2 + $0x38] sm:$0xff]  ;;  %281 = vst.msk [vmem:[#allocation3 + $0x10] sm:$0xff] %vm278_vm2, %v1928_v19  ;;  %282 = vst.msk [vmem:[#allocation3 + $0x18] sm:$0xff] %vm278_vm2, %v1928_v19  ;;  %v2836_v5 = vand.u32 127, %v874_v31 }
  0xf7   :  { %275 = vst.msk [vmem:[#allocation2 + $0x68] sm:$0xff] %vm53_vm0, %v257_v54  ;;  %1197 = vadd.xlane.f32.xlu0 %v1196_v24  ;;  %v1169_v45 = vmul.f32 %v318_v55, %v318_v55 }
  0xf8   :  { %276 = vst.msk [vmem:[#allocation2 + $0x70] sm:$0xff] %vm53_vm0, %v259_v52  ;;  %v323_v9 = vld [vmem:[#allocation2 + $0x60] sm:$0xff] }
  0xf9   :  { %v1199_v60 = vsel %vm53_vm0, %v1169_v45, 0.0  ;;  %v1174_v17 = vmul.f32 %v323_v9, %v323_v9  ;;  %283 = vst.msk [vmem:[#allocation3 + $0x20] sm:$0xff] %vm278_vm2, %v1928_v19  ;;  %284 = vst.msk [vmem:[#allocation3 + $0x28] sm:$0xff] %vm278_vm2, %v1928_v19  ;;  %v2838_v52 = vpop.permute.xlu1 %930 }
  0xfa   :  { %1200 = vadd.xlane.f32.xlu1 %v1199_v60  ;;  %285 = vst.msk [vmem:[#allocation3 + $0x30] sm:$0xff] %vm278_vm2, %v1928_v19  ;;  %286 = vst.msk [vmem:[#allocation3 + $0x38] sm:$0xff] %vm278_vm2, %v1928_v19 }
  0xfb   :  { %1568 = vmatmul.mubr.msk.f32.vlgmr.msra.gmra.mrb[0].mxu0 %vm53_vm0, %v2635_v50  ;;  %1580 = vmatmul.mubr.msk.f32.vlgmr.msra.gmra.mrb[0].mxu1 %vm53_vm0, %v320_v21  ;;  %v1208_v50 = vsel %vm53_vm0, %v1172_v36, 0.0  ;;  %v1214_v41 = vsel %vm53_vm0, %v1174_v17, 0.0  ;;  %287 = vst.msk [vmem:[#allocation3 + $0x40] sm:$0xff] %vm278_vm2, %v1928_v19  ;;  %288 = vst.msk [vmem:[#allocation3 + $0x48] sm:$0xff] %vm278_vm2, %v1928_v19 }
  0xfc   :  { %v1786_v16 = vpop.eup %1785  ;;  %1570 = vmatprep.mubr.msk.f32.mxu0 %vm53_vm0, %v2666_v34  ;;  %1203 = vadd.xlane.f32.xlu0 %v1202_v62  ;;  %v1211_v34 = vsel %vm53_vm0, %v1173_v63, 0.0  ;;  %289 = vst.msk [vmem:[#allocation3 + $0x50] sm:$0xff] %vm278_vm2, %v1928_v19  ;;  %290 = vst.msk [vmem:[#allocation3 + $0x58] sm:$0xff] %vm278_vm2, %v1928_v19 }
  0xfd   :  { %v261_v22 = vmul.f32 %v1926_v59, %v1786_v16  ;;  %1582 = vmatprep.mubr.msk.f32.mxu1 %vm53_vm0, %v321_v0  ;;  %291 = vst.msk [vmem:[#allocation3 + $0x60] sm:$0xff] %vm278_vm2, %v1928_v19  ;;  %292 = vst.msk [vmem:[#allocation3 + $0x68] sm:$0xff] %vm278_vm2, %v1928_v19  ;;  %v2849_v16 = vpop.permute.xlu1 %933 }
  0xfe   :  { %1206 = vadd.xlane.f32.xlu1 %v1205_v23  ;;  %v324_v11 = vld [vmem:[#allocation2 + $0x68] sm:$0xff]  ;;  %293 = vst.msk [vmem:[#allocation3 + $0x70] sm:$0xff] %vm278_vm2, %v1928_v19  ;;  %294 = vst.msk [vmem:[#allocation3 + $0x78] sm:$0xff] %vm278_vm2, %v1928_v19 }
  0xff   :  { %277 = vst.msk [vmem:[#allocation2 + $0x78] sm:$0xff] %vm53_vm0, %v261_v22  ;;  %1571 = vmatmul.mubr.msk.f32.gmra.mrb[2].mxu0 %vm53_vm0, %v2683_v10  ;;  %1583 = vmatmul.mubr.msk.f32.gmra.mrb[2].mxu1 %vm53_vm0, %v322_v38  ;;  %v1175_v44 = vmul.f32 %v324_v11, %v324_v11  ;;  %v325_v57 = vld [vmem:[#allocation2 + $0x70] sm:$0xff] }
 0x100   :  { %1209 = vadd.xlane.f32.xlu0 %v1208_v50  ;;  %1573 = vmatprep.mubr.msk.f32.mxu0 %vm53_vm0, %v2711_v39  ;;  %v1176_v12 = vmul.f32 %v325_v57, %v325_v57  ;;  %295 = vst.msk [vmem:[#allocation4] sm:$0xff] %vm278_vm2, %v1928_v19  ;;  %296 = vst.msk [vmem:[#allocation4 + $0x8] sm:$0xff] %vm278_vm2, %v1928_v19 }
 0x101   :  { %1585 = vmatprep.mubr.msk.f32.mxu1 %vm53_vm0, %v323_v9  ;;  %v1217_v10 = vsel %vm53_vm0, %v1175_v44, 0.0  ;;  %297 = vst.msk [vmem:[#allocation4 + $0x10] sm:$0xff] %vm278_vm2, %v1928_v19  ;;  %298 = vst.msk [vmem:[#allocation4 + $0x18] sm:$0xff] %vm278_vm2, %v1928_v19  ;;  %v916_v9 = vpop.permute.xlu0 %915  ;;  %v2858_v44 = vld [vmem:[%s3040_s2] ss:$0 sm:$0xff] }
 0x102   :  { %1212 = vadd.xlane.f32.xlu1 %v1211_v34  ;;  %v1220_v1 = vsel %vm53_vm0, %v1176_v12, 0.0  ;;  %299 = vst.msk [vmem:[#allocation4 + $0x20] sm:$0xff] %vm278_vm2, %v1928_v19  ;;  %300 = vst.msk [vmem:[#allocation4 + $0x28] sm:$0xff] %vm278_vm2, %v1928_v19  ;;  %v2862_v12 = vpop.permute.xlu1 %936  ;;  %vm967_vm8 = vcmp.eq.s32.totalorder %v2828_v15, %v2858_v44  ;;  %vm966_vm9 = vcmp.eq.s32.totalorder %v916_v9, %v2858_v44 }
 0x103   :  { %1574 = vmatmul.mubr.msk.f32.gmra.mrb[4].mxu0 %vm53_vm0, %v2727_v37  ;;  %1586 = vmatmul.mubr.msk.f32.gmra.mrb[4].mxu1 %vm53_vm0, %v324_v11  ;;  %301 = vst.msk [vmem:[#allocation4 + $0x30] sm:$0xff] %vm278_vm2, %v1928_v19  ;;  %302 = vst.msk [vmem:[#allocation4 + $0x38] sm:$0xff] %vm278_vm2, %v1928_v19  ;;  %vm969_vm12 = vcmp.eq.s32.totalorder %v2832_v29, %v2858_v44  ;;  %vm968_vm13 = vcmp.eq.s32.totalorder %v2830_v56, %v2858_v44 }
 0x104   :  { %1576 = vmatprep.mubr.msk.f32.mxu0 %vm53_vm0, %v317_v35  ;;  %1588 = vmatprep.mubr.msk.f32.mxu1 %vm53_vm0, %v325_v57  ;;  %303 = vst.msk [vmem:[#allocation4 + $0x40] sm:$0xff] %vm278_vm2, %v1928_v19  ;;  %304 = vst.msk [vmem:[#allocation4 + $0x48] sm:$0xff] %vm278_vm2, %v1928_v19  ;;  %vm971_vm1 = vcmp.eq.s32.totalorder %v2838_v52, %v2858_v44  ;;  %vm970_vm3 = vcmp.eq.s32.totalorder %v2834_v8, %v2858_v44 }
 0x105   :  { %1215 = vadd.xlane.f32.xlu0 %v1214_v41  ;;  %305 = vst.msk [vmem:[#allocation4 + $0x50] sm:$0xff] %vm278_vm2, %v1928_v19  ;;  %306 = vst.msk [vmem:[#allocation4 + $0x58] sm:$0xff] %vm278_vm2, %v1928_v19  ;;  %vm973_vm6 = vcmp.eq.s32.totalorder %v2862_v12, %v2858_v44  ;;  %vm972_vm7 = vcmp.eq.s32.totalorder %v2849_v16, %v2858_v44 }
 0x106   :  { %v326_v42 = vld [vmem:[#allocation2 + $0x78] sm:$0xff]  ;;  %1218 = vadd.xlane.f32.xlu1 %v1217_v10  ;;  %307 = vst.msk [vmem:[#allocation4 + $0x60] sm:$0xff] %vm278_vm2, %v1928_v19  ;;  %308 = vst.msk [vmem:[#allocation4 + $0x68] sm:$0xff] %vm278_vm2, %v1928_v19 }
 0x107   :  { %1577 = vmatmul.mubr.msk.f32.gmra.mrb[6].mxu0 %vm53_vm0, %v318_v55  ;;  %1589 = vmatmul.mubr.msk.f32.gmra.mrb[6].mxu1 %vm53_vm0, %v326_v42  ;;  %v1177_v25 = vmul.f32 %v326_v42, %v326_v42  ;;  %309 = vst.msk [vmem:[#allocation4 + $0x70] sm:$0xff] %vm278_vm2, %v1928_v19  ;;  %310 = vst.msk [vmem:[#allocation4 + $0x78] sm:$0xff] %vm278_vm2, %v1928_v19 }
 0x109   :  { %1221 = vadd.xlane.f32.xlu0 %v1220_v1  ;;  %v1223_v7 = vsel %vm53_vm0, %v1177_v25, 0.0  ;;  %vm878_vm0 = vcmp.lt.s32.totalorder %v2836_v5, 8  ;;  %v943_v1 = vpop.permute.xlu0 %942 }
 0x10a   :  { %1224 = vadd.xlane.f32.xlu1 %v1223_v7  ;;  %vm975_vm10 = vcmp.eq.s32.totalorder %v943_v1, %v2858_v44 }
 0x1ce   :  { %v1569_v6 = vpop.f32.mrb[0].mxu0  ;;  %v1581_v46 = vpop.f32.mrb[0].mxu1 }
 0x1cf   :  { %v1471_v39 = vadd.f32 -1.0, %v1569_v6  ;;  %v1479_v61 = vadd.f32 -1.0, %v1581_v46  ;;  %v730_v32 = vpop.f32.mrb[1].mxu0  ;;  %v770_v58 = vpop.f32.mrb[1].mxu1 }
 0x1d0   :  { %v1470_v33 = vadd.f32 -1.0, %v730_v32  ;;  %v1478_v30 = vadd.f32 -1.0, %v770_v58 }
 0x1d1   :  { %v826_v3 = vmul.f32 0.01, %v1471_v39  ;;  %v834_v4 = vmul.f32 0.01, %v1479_v61  ;;  %v940_v39 = vpop.permute.xlu1 %939 }
 0x1d2   :  { %v825_v37 = vmul.f32 0.01, %v1470_v33  ;;  %v833_v28 = vmul.f32 0.01, %v1478_v30  ;;  %v1572_v47 = vpop.f32.mrb[2].mxu0  ;;  %v1584_v2 = vpop.f32.mrb[2].mxu1  ;;  %vm974_vm11 = vcmp.eq.s32.totalorder %v940_v39, %v2858_v44 }
 0x1d3   :  { %v843_v26 = vmul.f32 1.442695, %v826_v3  ;;  %v859_v40 = vmul.f32 1.442695, %v834_v4  ;;  %v740_v27 = vpop.f32.mrb[3].mxu0  ;;  %v780_v43 = vpop.f32.mrb[3].mxu1 }
 0x1d4   :  { %v841_v20 = vmul.f32 1.442695, %v825_v37  ;;  %v857_v18 = vmul.f32 1.442695, %v833_v28  ;;  %v1473_v49 = vadd.f32 -1.0, %v1572_v47  ;;  %v1472_v54 = vadd.f32 -1.0, %v740_v27 }
 0x1d5   :  { %1787 = vpow2.f32 %v843_v26  ;;  %v1481_v21 = vadd.f32 -1.0, %v1584_v2  ;;  %v1480_v60 = vadd.f32 -1.0, %v780_v43 }
 0x1d6   :  { %1789 = vpow2.f32 %v859_v40  ;;  %v1575_v35 = vpop.f32.mrb[4].mxu0  ;;  %v1587_v48 = vpop.f32.mrb[4].mxu1  ;;  %v828_v24 = vmul.f32 0.01, %v1473_v49  ;;  %v827_v45 = vmul.f32 0.01, %v1472_v54 }
 0x1d7   :  { %1791 = vpow2.f32 %v841_v20  ;;  %v750_v13 = vpop.f32.mrb[5].mxu0  ;;  %v790_v51 = vpop.f32.mrb[5].mxu1  ;;  %v836_v62 = vmul.f32 0.01, %v1481_v21  ;;  %v835_v50 = vmul.f32 0.01, %v1480_v60 }
 0x1d8   :  { %1793 = vpow2.f32 %v857_v18  ;;  %v847_v38 = vmul.f32 1.442695, %v828_v24  ;;  %v845_v23 = vmul.f32 1.442695, %v827_v45  ;;  %v1475_v42 = vadd.f32 -1.0, %v1575_v35 }
 0x1d9   :  { %v863_v34 = vmul.f32 1.442695, %v836_v62  ;;  %v861_v41 = vmul.f32 1.442695, %v835_v50  ;;  %v1474_v7 = vadd.f32 -1.0, %v750_v13  ;;  %v1483_v46 = vadd.f32 -1.0, %v1587_v48  ;;  %v949_v13 = vpop.permute.xlu0 %948 }
 0x1da   :  { %v2840_v55 = vpop.f32.mrb[6].mxu0  ;;  %v2842_v0 = vpop.f32.mrb[6].mxu1  ;;  %1795 = vpow2.f32 %v847_v38  ;;  %v830_v6 = vmul.f32 0.01, %v1475_v42  ;;  %v1482_v58 = vadd.f32 -1.0, %v790_v51  ;;  %vm977_vm14 = vcmp.eq.s32.totalorder %v949_v13, %v2858_v44 }
 0x1db   :  { %v2844_v14 = vpop.f32.mrb[7].mxu0  ;;  %v2847_v53 = vpop.f32.mrb[7].mxu1  ;;  %1797 = vpow2.f32 %v845_v23  ;;  %v829_v15 = vmul.f32 0.01, %v1474_v7  ;;  %v838_v4 = vmul.f32 0.01, %v1483_v46 }
 0x1dc   :  { %1799 = vpow2.f32 %v863_v34  ;;  %v851_v3 = vmul.f32 1.442695, %v830_v6  ;;  %v837_v2 = vmul.f32 0.01, %v1482_v58  ;;  %v1477_v27 = vadd.f32 -1.0, %v2840_v55 }
 0x1dd   :  { %1801 = vpow2.f32 %v861_v41  ;;  %v849_v47 = vmul.f32 1.442695, %v829_v15  ;;  %v867_v20 = vmul.f32 1.442695, %v838_v4  ;;  %v1476_v31 = vadd.f32 -1.0, %v2844_v14  ;;  %v946_v14 = vpop.permute.xlu1 %945  ;;  %v955_v52 = vpop.permute.xlu0 %954 }
 0x1de   :  { %1803 = vpow2.f32 %v851_v3  ;;  %v865_v18 = vmul.f32 1.442695, %v837_v2  ;;  %v832_v48 = vmul.f32 0.01, %v1477_v27  ;;  %v1485_v49 = vadd.f32 -1.0, %v2842_v0 }
 0x1df   :  { %v1788_v36 = vpop.eup %1787  ;;  %1805 = vpow2.f32 %v849_v47  ;;  %v831_v54 = vmul.f32 0.01, %v1476_v31  ;;  %v1484_v24 = vadd.f32 -1.0, %v2847_v53  ;;  %vm976_vm15 = vcmp.eq.s32.totalorder %v946_v14, %v2858_v44  ;;  %v998_v14 = vld [vmem:[#allocation3] sm:$0xff] }
 0x1e0   :  { %v1790_v63 = vpop.eup %1789  ;;  %v882_v59 = vsel %vm878_vm0, %v1788_v36, 0.0  ;;  %1807 = vpow2.f32 %v867_v20  ;;  %v855_v55 = vmul.f32 1.442695, %v832_v48  ;;  %v840_v29 = vmul.f32 0.01, %v1485_v49 }
 0x1e1   :  { %v1792_v22 = vpop.eup %1791  ;;  %1016 = vadd.xlane.f32.xlu1 %v882_v59  ;;  %v890_v57 = vsel %vm878_vm0, %v1790_v63, 0.0  ;;  %v983_v25 = vsel %vm967_vm8, %v882_v59, 0.0  ;;  %1809 = vpow2.f32 %v865_v18  ;;  %v853_v60 = vmul.f32 1.442695, %v831_v54  ;;  %v952_v7 = vpop.permute.xlu1 %951 }
 0x1e2   :  { %v881_v11 = vsel %vm878_vm0, %v1792_v22, 0.0  ;;  %v1794_v17 = vpop.eup %1793  ;;  %v991_v61 = vsel %vm975_vm10, %v890_v57, 0.0  ;;  %v839_v56 = vmul.f32 0.01, %v1484_v24  ;;  %1811 = vpow2.f32 %v855_v55  ;;  %v961_v39 = vpop.permute.xlu0 %960 }
 0x1e3   :  { %1014 = vadd.xlane.f32.xlu0 %v881_v11  ;;  %v889_v10 = vsel %vm878_vm0, %v1794_v17, 0.0  ;;  %v982_v19 = vsel %vm966_vm9, %v881_v11, 0.0  ;;  %v871_v62 = vmul.f32 1.442695, %v840_v29  ;;  %1813 = vpow2.f32 %v853_v60 }
 0x1e4   :  { %v1796_v32 = vpop.eup %1795  ;;  %v990_v33 = vsel %vm974_vm11, %v889_v10, 0.0  ;;  %v869_v59 = vmul.f32 1.442695, %v839_v56  ;;  %vm979_vm4 = vcmp.eq.s32.totalorder %v955_v52, %v2858_v44  ;;  %vm978_vm5 = vcmp.eq.s32.totalorder %v952_v7, %v2858_v44  ;;  %v1007_v56 = vld [vmem:[#allocation3 + $0x48] sm:$0xff] }
 0x1e5   :  { %1032 = vadd.xlane.f32.xlu1 %v890_v57  ;;  %v1798_v30 = vpop.eup %1797  ;;  %v884_v37 = vsel %vm878_vm0, %v1796_v32, 0.0  ;;  %1815 = vpow2.f32 %v871_v62  ;;  %v958_v5 = vpop.permute.xlu1 %957 }
 0x1e6   :  { %v1800_v28 = vpop.eup %1799  ;;  %v883_v26 = vsel %vm878_vm0, %v1798_v30, 0.0  ;;  %v985_v51 = vsel %vm969_vm12, %v884_v37, 0.0  ;;  %1817 = vpow2.f32 %v869_v59  ;;  %vm980_vm8 = vcmp.eq.s32.totalorder %v958_v5, %v2858_v44  ;;  %v1183_v58 = vpop.xlane.xlu0 %1182  ;;  %v1087_v5 = vld [vmem:[#allocation4 + $0x40] sm:$0xff] }
 0x1e7   :  { %1030 = vadd.xlane.f32.xlu0 %v889_v10  ;;  %v1802_v40 = vpop.eup %1801  ;;  %v892_v43 = vsel %vm878_vm0, %v1800_v28, 0.0  ;;  %v984_v21 = vsel %vm968_vm13, %v883_v26, 0.0  ;;  %v1488_v2 = vadd.f32 -1.0, %v1183_v58 }
 0x1e8   :  { %v891_v35 = vsel %vm878_vm0, %v1802_v40, 0.0  ;;  %v993_v45 = vsel %vm977_vm14, %v892_v43, 0.0  ;;  %v1804_v0 = vpop.eup %1803 }
 0x1e9   :  { %1097 = vadd.xlane.f32.xlu1 %v983_v25  ;;  %v992_v36 = vsel %vm976_vm15, %v891_v35, 0.0  ;;  %v1806_v38 = vpop.eup %1805  ;;  %v886_v53 = vsel %vm878_vm0, %v1804_v0, 0.0  ;;  %v1180_v12 = vpop.xlane.xlu1 %1179  ;;  %v1243_v20 = vmul.f32 0.01, %v1488_v2 }
 0x1ea   :  { %v1808_v63 = vpop.eup %1807  ;;  %v885_v22 = vsel %vm878_vm0, %v1806_v38, 0.0  ;;  %v987_v11 = vsel %vm971_vm1, %v886_v53, 0.0  ;;  %v1186_v30 = vpop.xlane.xlu0 %1185 }
 0x1eb   :  { %1095 = vadd.xlane.f32.xlu0 %v982_v19  ;;  %v1810_v23 = vpop.eup %1809  ;;  %v894_v50 = vsel %vm878_vm0, %v1808_v63, 0.0  ;;  %v986_v34 = vsel %vm970_vm3, %v885_v22, 0.0  ;;  %v1260_v48 = vmul.f32 1.442695, %v1243_v20  ;;  %v1489_v59 = vadd.f32 -1.0, %v1186_v30 }
 0x1ec   :  { %v893_v9 = vsel %vm878_vm0, %v1810_v23, 0.0  ;;  %v1812_v17 = vpop.eup %1811  ;;  %v995_v19 = vsel %vm979_vm4, %v894_v50, 0.0  ;;  %v1080_v23 = vld [vmem:[#allocation4 + $0x8] sm:$0xff] }
 0x1ed   :  { %1113 = vadd.xlane.f32.xlu1 %v991_v61  ;;  %v1814_v57 = vpop.eup %1813  ;;  %v888_v41 = vsel %vm878_vm0, %v1812_v17, 0.0  ;;  %v994_v6 = vsel %vm978_vm5, %v893_v9, 0.0  ;;  %1819 = vpow2.f32 %v1260_v48 }
 0x1ee   :  { %v887_v42 = vsel %vm878_vm0, %v1814_v57, 0.0  ;;  %v989_v46 = vsel %vm973_vm6, %v888_v41, 0.0  ;;  %v2919_v16 = vpop.xlane.xlu0 %1191 }
 0x1ef   :  { %1111 = vadd.xlane.f32.xlu0 %v990_v33  ;;  %v1816_v10 = vpop.eup %1815  ;;  %v988_v61 = vsel %vm972_vm7, %v887_v42, 0.0  ;;  %v1189_v33 = vpop.xlane.xlu1 %1188 }
 0x1f0   :  { %v1818_v1 = vpop.eup %1817  ;;  %v896_v25 = vsel %vm878_vm0, %v1816_v10, 0.0  ;;  %v1490_v38 = vadd.f32 -1.0, %v1189_v33  ;;  %v1244_v10 = vmul.f32 0.01, %v1489_v59 }
 0x1f1   :  { %1020 = vadd.xlane.f32.xlu1 %v884_v37  ;;  %v895_v8 = vsel %vm878_vm0, %v1818_v1, 0.0  ;;  %vm981_vm0 = vcmp.eq.s32.totalorder %v961_v39, %v2858_v44  ;;  %v1487_v44 = vadd.f32 -1.0, %v1180_v12 }
 0x1f2   :  { %v997_v32 = vsel %vm981_vm0, %v896_v25, 0.0  ;;  %v996_v15 = vsel %vm980_vm8, %v895_v8, 0.0  ;;  %v2923_v37 = vpop.xlane.xlu0 %1197  ;;  %v1262_v12 = vmul.f32 1.442695, %v1244_v10 }
 0x1f3   :  { %1018 = vadd.xlane.f32.xlu0 %v883_v26  ;;  %v2917_v3 = vpop.xlane.xlu1 %1194  ;;  %v1242_v18 = vmul.f32 0.01, %v1487_v44 }
 0x1f4   :  { %v1492_v2 = vadd.f32 -1.0, %v2917_v3  ;;  %v1009_v3 = vld [vmem:[#allocation3 + $0x58] sm:$0xff] }
 0x1f5   :  { %1036 = vadd.xlane.f32.xlu1 %v892_v43 }
 0x1f6   :  { %v1204_v47 = vpop.xlane.xlu0 %1203 }
 0x1f7   :  { %1034 = vadd.xlane.f32.xlu0 %v891_v35  ;;  %v2921_v4 = vpop.xlane.xlu1 %1200  ;;  %v1495_v31 = vadd.f32 -1.0, %v1204_v47  ;;  %v1001_v47 = vld [vmem:[#allocation3 + $0x18] sm:$0xff] }
 0x1f9   :  { %1101 = vadd.xlane.f32.xlu1 %v985_v51  ;;  %v1258_v51 = vmul.f32 1.442695, %v1242_v18  ;;  %v1250_v54 = vmul.f32 0.01, %v1495_v31  ;;  %v1000_v31 = vld [vmem:[#allocation3 + $0x10] sm:$0xff] }
 0x1fa   :  { %v1210_v40 = vpop.xlane.xlu0 %1209 }
 0x1fb   :  { %1099 = vadd.xlane.f32.xlu0 %v984_v21  ;;  %v1207_v28 = vpop.xlane.xlu1 %1206  ;;  %v999_v21 = vld [vmem:[#allocation3 + $0x8] sm:$0xff]  ;;  %1821 = vpow2.f32 %v1258_v51  ;;  %v1274_v0 = vmul.f32 1.442695, %v1250_v54 }
 0x1fc   :  { %v1496_v27 = vadd.f32 -1.0, %v1207_v28 }
 0x1fd   :  { %1117 = vadd.xlane.f32.xlu1 %v993_v45 }
 0x1fe   :  { %v2927_v35 = vpop.xlane.xlu0 %1215  ;;  %v1251_v49 = vmul.f32 0.01, %v1496_v27 }
 0x1ff   :  { %1115 = vadd.xlane.f32.xlu0 %v992_v36  ;;  %v1213_v26 = vpop.xlane.xlu1 %1212 }
 0x200   :  { %v1276_v55 = vmul.f32 1.442695, %v1251_v49 }
 0x201   :  { %1024 = vadd.xlane.f32.xlu1 %v886_v53  ;;  %v1006_v53 = vld [vmem:[#allocation3 + $0x40] sm:$0xff] }
 0x202   :  { %v2931_v24 = vpop.xlane.xlu0 %1221  ;;  %1823 = vpow2.f32 %v1276_v55  ;;  %v1247_v55 = vmul.f32 0.01, %v1492_v2 }
 0x203   :  { %1022 = vadd.xlane.f32.xlu0 %v885_v22  ;;  %v2925_v43 = vpop.xlane.xlu1 %1218  ;;  %1825 = vpow2.f32 %v1274_v0  ;;  %v1008_v0 = vld [vmem:[#allocation3 + $0x50] sm:$0xff] }
 0x205   :  { %1040 = vadd.xlane.f32.xlu1 %v894_v50 }
 0x207   :  { %1038 = vadd.xlane.f32.xlu0 %v893_v9  ;;  %v2929_v13 = vpop.xlane.xlu1 %1224  ;;  %v1245_v9 = vmul.f32 0.01, %v1490_v38 }
 0x209   :  { %1105 = vadd.xlane.f32.xlu1 %v987_v11  ;;  %v1498_v11 = vadd.f32 -1.0, %v1213_v26 }
 0x20b   :  { %1103 = vadd.xlane.f32.xlu0 %v986_v34  ;;  %v1079_v34 = vld [vmem:[#allocation4] sm:$0xff] }
 0x20d   :  { %1028 = vadd.xlane.f32.xlu1 %v888_v41  ;;  %v1820_v41 = vpop.eup %1819 }
 0x20f   :  { %1026 = vadd.xlane.f32.xlu0 %v887_v42  ;;  %v1497_v42 = vadd.f32 -1.0, %v1210_v40 }
 0x211   :  { %1044 = vadd.xlane.f32.xlu1 %v896_v25  ;;  %v1088_v25 = vld [vmem:[#allocation4 + $0x48] sm:$0xff]  ;;  %v1252_v33 = vmul.f32 0.01, %v1497_v42  ;;  %v1500_v42 = vadd.f32 -1.0, %v2925_v43 }
 0x213   :  { %1042 = vadd.xlane.f32.xlu0 %v895_v8  ;;  %v1278_v51 = vmul.f32 1.442695, %v1252_v33  ;;  %v1499_v33 = vadd.f32 -1.0, %v2927_v35 }
 0x215   :  { %1121 = vadd.xlane.f32.xlu1 %v995_v19  ;;  %v1822_v19 = vpop.eup %1821 }
 0x216   :  { %v1824_v58 = vpop.eup %1823 }
 0x217   :  { %1119 = vadd.xlane.f32.xlu0 %v994_v6  ;;  %v1264_v6 = vmul.f32 1.442695, %v1245_v9  ;;  %v1826_v40 = vpop.eup %1825 }
 0x219   :  { %1109 = vadd.xlane.f32.xlu1 %v989_v46  ;;  %v1253_v46 = vmul.f32 0.01, %v1498_v11  ;;  %v1081_v11 = vld [vmem:[#allocation4 + $0x10] sm:$0xff] }
 0x21b   :  { %1107 = vadd.xlane.f32.xlu0 %v988_v61  ;;  %v1280_v20 = vmul.f32 1.442695, %v1253_v46 }
 0x21d   :  { %1125 = vadd.xlane.f32.xlu1 %v997_v32 }
 0x21f   :  { %1123 = vadd.xlane.f32.xlu0 %v996_v15 }
 0x26e   :  { %v1017_v29 = vpop.xlane.xlu1 %1016 }
 0x26f   :  { %v1047_v45 = vadd.f32 %v1017_v29, %v999_v21  ;;  %v1491_v21 = vadd.f32 -1.0, %v2919_v16  ;;  %v1268_v16 = vmul.f32 1.442695, %v1247_v55 }
 0x270   :  { %v1015_v60 = vpop.xlane.xlu0 %1014 }
 0x271   :  { %1064 = vst.msk [vmem:[#allocation3 + $0x8] sm:$0xff] %vm278_vm2, %v1047_v45  ;;  %v1046_v36 = vadd.f32 %v1015_v60, %v998_v14 }
 0x272   :  { %v1033_v62 = vpop.xlane.xlu1 %1032 }
 0x273   :  { %1063 = vst.msk [vmem:[#allocation3] sm:$0xff] %vm278_vm2, %v1046_v36  ;;  %v1055_v63 = vadd.f32 %v1033_v62, %v1007_v56  ;;  %v1082_v62 = vld [vmem:[#allocation4 + $0x18] sm:$0xff] }
 0x274   :  { %v1031_v22 = vpop.xlane.xlu0 %1030 }
 0x275   :  { %1072 = vst.msk [vmem:[#allocation3 + $0x48] sm:$0xff] %vm278_vm2, %v1055_v63  ;;  %v1054_v50 = vadd.f32 %v1031_v22, %v1006_v53  ;;  %v1246_v63 = vmul.f32 0.01, %v1491_v21 }
 0x276   :  { %v1098_v17 = vpop.xlane.xlu1 %1097 }
 0x277   :  { %1071 = vst.msk [vmem:[#allocation3 + $0x40] sm:$0xff] %vm278_vm2, %v1054_v50  ;;  %v1128_v57 = vadd.f32 %v1098_v17, %v1080_v23 }
 0x278   :  { %v1291_v1 = vld [vmem:[#allocation3 + $0x8] sm:$0xff]  ;;  %v1096_v52 = vpop.xlane.xlu0 %1095 }
 0x279   :  { %v1307_v8 = vsub.f32 %v1291_v1, %v1820_v41  ;;  %1144 = vst.msk [vmem:[#allocation4 + $0x8] sm:$0xff] %vm278_vm2, %v1128_v57  ;;  %v1127_v7 = vadd.f32 %v1096_v52, %v1079_v34  ;;  %v1493_v34 = vadd.f32 -1.0, %v2923_v37 }
 0x27a   :  { %v1290_v39 = vld [vmem:[#allocation3] sm:$0xff]  ;;  %v1114_v61 = vpop.xlane.xlu1 %1113 }
 0x27b   :  { %1827 = vrcp.f32 %v1307_v8  ;;  %v1306_v32 = vsub.f32 %v1290_v39, %v1822_v19  ;;  %1143 = vst.msk [vmem:[#allocation4] sm:$0xff] %vm278_vm2, %v1127_v7  ;;  %v1136_v15 = vadd.f32 %v1114_v61, %v1088_v25  ;;  %v1090_v7 = vld [vmem:[#allocation4 + $0x58] sm:$0xff]  ;;  %v1494_v61 = vadd.f32 -1.0, %v2921_v4 }
 0x27c   :  { %v1299_v30 = vld [vmem:[#allocation3 + $0x48] sm:$0xff]  ;;  %v1112_v28 = vpop.xlane.xlu0 %1111  ;;  %v1248_v2 = vmul.f32 0.01, %v1493_v34 }
 0x27d   :  { %1829 = vrcp.f32 %v1306_v32  ;;  %v1315_v26 = vsub.f32 %v1299_v30, %v1824_v58  ;;  %1152 = vst.msk [vmem:[#allocation4 + $0x48] sm:$0xff] %vm278_vm2, %v1136_v15  ;;  %v1135_v44 = vadd.f32 %v1112_v28, %v1087_v5  ;;  %v1089_v58 = vld [vmem:[#allocation4 + $0x50] sm:$0xff]  ;;  %v1084_v34 = vld [vmem:[#allocation4 + $0x28] sm:$0xff] }
 0x27e   :  { %1831 = vpow2.f32 %v1264_v6  ;;  %v1298_v27 = vld [vmem:[#allocation3 + $0x40] sm:$0xff]  ;;  %v1021_v18 = vpop.xlane.xlu1 %1020  ;;  %v1266_v6 = vmul.f32 1.442695, %v1246_v63 }
 0x27f   :  { %1833 = vrcp.f32 %v1315_v26  ;;  %v1314_v48 = vsub.f32 %v1298_v27, %v1826_v40  ;;  %1151 = vst.msk [vmem:[#allocation4 + $0x40] sm:$0xff] %vm278_vm2, %v1135_v44  ;;  %v1049_v49 = vadd.f32 %v1021_v18, %v1001_v47  ;;  %v1255_v26 = vmul.f32 0.01, %v1500_v42 }
 0x280   :  { %1835 = vpow2.f32 %v1262_v12  ;;  %v1019_v54 = vpop.xlane.xlu0 %1018  ;;  %v1323_v29 = vld [vmem:[#allocation4 + $0x8] sm:$0xff]  ;;  %v1502_v27 = vadd.f32 -1.0, %v2929_v13 }
 0x281   :  { %1837 = vrcp.f32 %v1314_v48  ;;  %1066 = vst.msk [vmem:[#allocation3 + $0x18] sm:$0xff] %vm278_vm2, %v1049_v49  ;;  %v1048_v14 = vadd.f32 %v1019_v54, %v1000_v31  ;;  %v1339_v36 = vadd.f32 1e-09, %v1323_v29  ;;  %v1249_v48 = vmul.f32 0.01, %v1494_v61  ;;  %v1002_v54 = vld [vmem:[#allocation3 + $0x20] sm:$0xff] }
 0x282   :  { %1839 = vpow2.f32 %v1280_v20  ;;  %v1037_v45 = vpop.xlane.xlu1 %1036  ;;  %v1322_v60 = vld [vmem:[#allocation4] sm:$0xff]  ;;  %v1003_v20 = vld [vmem:[#allocation3 + $0x28] sm:$0xff]  ;;  %v1270_v29 = vmul.f32 1.442695, %v1248_v2 }
 0x283   :  { %1065 = vst.msk [vmem:[#allocation3 + $0x10] sm:$0xff] %vm278_vm2, %v1048_v14  ;;  %v1057_v56 = vadd.f32 %v1037_v45, %v1009_v3  ;;  %1841 = vpow2.f32 %v1278_v51  ;;  %v1338_v50 = vadd.f32 1e-09, %v1322_v60  ;;  %v1254_v3 = vmul.f32 0.01, %v1499_v33  ;;  %v1011_v14 = vld [vmem:[#allocation3 + $0x68] sm:$0xff] }
 0x284   :  { %v1035_v38 = vpop.xlane.xlu0 %1034  ;;  %v1331_v59 = vld [vmem:[#allocation4 + $0x48] sm:$0xff]  ;;  %v1284_v45 = vmul.f32 1.442695, %v1255_v26 }
 0x285   :  { %v1828_v53 = vpop.eup %1827  ;;  %1074 = vst.msk [vmem:[#allocation3 + $0x58] sm:$0xff] %vm278_vm2, %v1057_v56  ;;  %v1056_v22 = vadd.f32 %v1035_v38, %v1008_v0  ;;  %v1347_v52 = vadd.f32 1e-09, %v1331_v59  ;;  %v1257_v0 = vmul.f32 0.01, %v1502_v27 }
 0x286   :  { %v1357_v23 = vmul.f32 %v1828_v53, %v1339_v36  ;;  %v1102_v9 = vpop.xlane.xlu1 %1101  ;;  %v1330_v57 = vld [vmem:[#allocation4 + $0x40] sm:$0xff]  ;;  %v1272_v38 = vmul.f32 1.442695, %v1249_v48 }
 0x287   :  { %v1830_v17 = vpop.eup %1829  ;;  %1073 = vst.msk [vmem:[#allocation3 + $0x50] sm:$0xff] %vm278_vm2, %v1056_v22  ;;  %v1130_v41 = vadd.f32 %v1102_v9, %v1082_v62  ;;  %v1346_v32 = vadd.f32 1e-09, %v1330_v57  ;;  %v1010_v53 = vld [vmem:[#allocation3 + $0x60] sm:$0xff]  ;;  %v1501_v9 = vadd.f32 -1.0, %v2931_v24 }
 0x288   :  { %v1832_v10 = vpop.eup %1831  ;;  %1843 = vlog2.f32 %v1357_v23  ;;  %v1355_v1 = vmul.f32 %v1830_v17, %v1338_v50  ;;  %v1293_v25 = vld [vmem:[#allocation3 + $0x18] sm:$0xff]  ;;  %v1100_v8 = vpop.xlane.xlu0 %1099 }
 0x289   :  { %v1834_v19 = vpop.eup %1833  ;;  %1845 = vpow2.f32 %v1268_v16  ;;  %v1309_v46 = vsub.f32 %v1293_v25, %v1832_v10  ;;  %1146 = vst.msk [vmem:[#allocation4 + $0x18] sm:$0xff] %vm278_vm2, %v1130_v41  ;;  %v1129_v37 = vadd.f32 %v1100_v8, %v1081_v11  ;;  %v1282_v16 = vmul.f32 1.442695, %v1254_v3 }
 0x28a   :  { %v1836_v39 = vpop.eup %1835  ;;  %1847 = vlog2.f32 %v1355_v1  ;;  %v1373_v5 = vmul.f32 %v1834_v19, %v1347_v52  ;;  %v1292_v43 = vld [vmem:[#allocation3 + $0x10] sm:$0xff]  ;;  %v1118_v15 = vpop.xlane.xlu1 %1117  ;;  %v1288_v41 = vmul.f32 1.442695, %v1257_v0  ;;  %v1256_v61 = vmul.f32 0.01, %v1501_v9 }
 0x28b   :  { %v1838_v12 = vpop.eup %1837  ;;  %1849 = vrcp.f32 %v1309_v46  ;;  %v1308_v30 = vsub.f32 %v1292_v43, %v1836_v39  ;;  %1145 = vst.msk [vmem:[#allocation4 + $0x10] sm:$0xff] %vm278_vm2, %v1129_v37  ;;  %v1138_v28 = vadd.f32 %v1118_v15, %v1090_v7  ;;  %v1083_v7 = vld [vmem:[#allocation4 + $0x20] sm:$0xff] }
 0x28c   :  { %v1840_v47 = vpop.eup %1839  ;;  %1851 = vlog2.f32 %v1373_v5  ;;  %v1371_v44 = vmul.f32 %v1838_v12, %v1346_v32  ;;  %v1301_v4 = vld [vmem:[#allocation3 + $0x58] sm:$0xff]  ;;  %v1116_v40 = vpop.xlane.xlu0 %1115 }
 0x28d   :  { %1853 = vrcp.f32 %v1308_v30  ;;  %v1317_v18 = vsub.f32 %v1301_v4, %v1840_v47  ;;  %1154 = vst.msk [vmem:[#allocation4 + $0x58] sm:$0xff] %vm278_vm2, %v1138_v28  ;;  %v1137_v35 = vadd.f32 %v1116_v40, %v1089_v58  ;;  %v1842_v31 = vpop.eup %1841  ;;  %v1005_v58 = vld [vmem:[#allocation3 + $0x38] sm:$0xff]  ;;  %v1004_v40 = vld [vmem:[#allocation3 + $0x30] sm:$0xff] }
 0x28e   :  { %1855 = vlog2.f32 %v1371_v44  ;;  %v1300_v49 = vld [vmem:[#allocation3 + $0x50] sm:$0xff]  ;;  %v1025_v51 = vpop.xlane.xlu1 %1024 }
 0x28f   :  { %1857 = vrcp.f32 %v1317_v18  ;;  %v1316_v21 = vsub.f32 %v1300_v49, %v1842_v31  ;;  %1153 = vst.msk [vmem:[#allocation4 + $0x50] sm:$0xff] %vm278_vm2, %v1137_v35  ;;  %v1051_v55 = vadd.f32 %v1025_v51, %v1003_v20  ;;  %v1286_v35 = vmul.f32 1.442695, %v1256_v61  ;;  %v1013_v49 = vld [vmem:[#allocation3 + $0x78] sm:$0xff] }
 0x290   :  { %1859 = vpow2.f32 %v1266_v6  ;;  %v1023_v13 = vpop.xlane.xlu0 %1022  ;;  %v1325_v60 = vld [vmem:[#allocation4 + $0x18] sm:$0xff] }
 0x291   :  { %1861 = vrcp.f32 %v1316_v21  ;;  %1068 = vst.msk [vmem:[#allocation3 + $0x28] sm:$0xff] %vm278_vm2, %v1051_v55  ;;  %v1050_v56 = vadd.f32 %v1023_v13, %v1002_v54  ;;  %v1341_v11 = vadd.f32 1e-09, %v1325_v60  ;;  %v1012_v55 = vld [vmem:[#allocation3 + $0x70] sm:$0xff] }
 0x292   :  { %v1844_v36 = vpop.eup %1843  ;;  %v1041_v62 = vpop.xlane.xlu1 %1040  ;;  %v1324_v22 = vld [vmem:[#allocation4 + $0x10] sm:$0xff]  ;;  %1863 = vpow2.f32 %v1270_v29 }
 0x293   :  { %v1846_v63 = vpop.eup %1845  ;;  %v1389_v59 = vmul.f32 0.6931472, %v1844_v36  ;;  %1067 = vst.msk [vmem:[#allocation3 + $0x20] sm:$0xff] %vm278_vm2, %v1050_v56  ;;  %v1059_v23 = vadd.f32 %v1041_v62, %v1011_v14  ;;  %1865 = vpow2.f32 %v1284_v45  ;;  %v1340_v24 = vadd.f32 1e-09, %v1324_v22  ;;  %v1092_v56 = vld [vmem:[#allocation4 + $0x68] sm:$0xff] }
 0x294   :  { %v1848_v50 = vpop.eup %1847  ;;  %v1039_v17 = vpop.xlane.xlu0 %1038  ;;  %v1333_v42 = vld [vmem:[#allocation4 + $0x58] sm:$0xff]  ;;  %1867 = vpow2.f32 %v1272_v38 }
 0x295   :  { %v1850_v57 = vpop.eup %1849  ;;  %1419 = vst.msk [vmem:[%s3041_s4 + $0x8] sm:$0xff] %vm278_vm2, %v1389_v59  ;;  %v1387_v10 = vmul.f32 0.6931472, %v1848_v50  ;;  %1076 = vst.msk [vmem:[#allocation3 + $0x68] sm:$0xff] %vm278_vm2, %v1059_v23  ;;  %v1058_v1 = vadd.f32 %v1039_v17, %v1010_v53  ;;  %1869 = vpow2.f32 %v1282_v16  ;;  %v1349_v32 = vadd.f32 1e-09, %v1333_v42 }
 0x296   :  { %v1852_v52 = vpop.eup %1851  ;;  %v1361_v25 = vmul.f32 %v1850_v57, %v1341_v11  ;;  %v1106_v8 = vpop.xlane.xlu1 %1105  ;;  %v1332_v46 = vld [vmem:[#allocation4 + $0x50] sm:$0xff]  ;;  %v1091_v59 = vld [vmem:[#allocation4 + $0x60] sm:$0xff] }
 0x297   :  { %v1854_v19 = vpop.eup %1853  ;;  %1418 = vst.msk [vmem:[%s3041_s4] sm:$0xff] %vm278_vm2, %v1387_v10  ;;  %v1405_v6 = vmul.f32 0.6931472, %v1852_v52  ;;  %1075 = vst.msk [vmem:[#allocation3 + $0x60] sm:$0xff] %vm278_vm2, %v1058_v1  ;;  %v1132_v37 = vadd.f32 %v1106_v8, %v1084_v34  ;;  %v1348_v26 = vadd.f32 1e-09, %v1332_v46 }
 0x298   :  { %v1856_v39 = vpop.eup %1855  ;;  %1871 = vlog2.f32 %v1361_v25  ;;  %v1359_v5 = vmul.f32 %v1854_v19, %v1340_v24  ;;  %v1295_v43 = vld [vmem:[#allocation3 + $0x28] sm:$0xff]  ;;  %v1104_v15 = vpop.xlane.xlu0 %1103 }
 0x299   :  { %v1858_v12 = vpop.eup %1857  ;;  %1873 = vpow2.f32 %v1288_v41  ;;  %1427 = vst.msk [vmem:[%s3041_s4 + $0x48] sm:$0xff] %vm278_vm2, %v1405_v6  ;;  %v1403_v33 = vmul.f32 0.6931472, %v1856_v39  ;;  %v1311_v30 = vsub.f32 %v1295_v43, %v1846_v63  ;;  %1148 = vst.msk [vmem:[#allocation4 + $0x28] sm:$0xff] %vm278_vm2, %v1132_v37  ;;  %v1131_v28 = vadd.f32 %v1104_v15, %v1083_v7  ;;  %v1086_v41 = vld [vmem:[#allocation4 + $0x38] sm:$0xff]  ;;  %v1085_v6 = vld [vmem:[#allocation4 + $0x30] sm:$0xff] }
 0x29a   :  { %v1860_v47 = vpop.eup %1859  ;;  %1875 = vlog2.f32 %v1359_v5  ;;  %v1377_v2 = vmul.f32 %v1858_v12, %v1349_v32  ;;  %v1294_v44 = vld [vmem:[#allocation3 + $0x20] sm:$0xff]  ;;  %v1029_v4 = vpop.xlane.xlu1 %1028 }
 0x29b   :  { %v1862_v20 = vpop.eup %1861  ;;  %1426 = vst.msk [vmem:[%s3041_s4 + $0x40] sm:$0xff] %vm278_vm2, %v1403_v33  ;;  %1877 = vrcp.f32 %v1311_v30  ;;  %v1310_v27 = vsub.f32 %v1294_v44, %v1860_v47  ;;  %1147 = vst.msk [vmem:[#allocation4 + $0x20] sm:$0xff] %vm278_vm2, %v1131_v28  ;;  %v1053_v18 = vadd.f32 %v1029_v4, %v1005_v58  ;;  %v1094_v58 = vld [vmem:[#allocation4 + $0x78] sm:$0xff] }
 0x29c   :  { %1879 = vlog2.f32 %v1377_v2  ;;  %v1375_v31 = vmul.f32 %v1862_v20, %v1348_v26  ;;  %v1027_v48 = vpop.xlane.xlu0 %1026  ;;  %v1303_v51 = vld [vmem:[#allocation3 + $0x68] sm:$0xff]  ;;  %v1864_v3 = vpop.eup %1863  ;;  %v1093_v26 = vld [vmem:[#allocation4 + $0x70] sm:$0xff] }
 0x29d   :  { %1881 = vrcp.f32 %v1310_v27  ;;  %1070 = vst.msk [vmem:[#allocation3 + $0x38] sm:$0xff] %vm278_vm2, %v1053_v18  ;;  %v1052_v54 = vadd.f32 %v1027_v48, %v1004_v40  ;;  %v1866_v29 = vpop.eup %1865 }
 0x29e   :  { %1883 = vlog2.f32 %v1375_v31  ;;  %v1045_v21 = vpop.xlane.xlu1 %1044  ;;  %v1302_v13 = vld [vmem:[#allocation3 + $0x60] sm:$0xff]  ;;  %v1868_v45 = vpop.eup %1867  ;;  %v1319_v0 = vsub.f32 %v1303_v51, %v1866_v29 }
 0x29f   :  { %1069 = vst.msk [vmem:[#allocation3 + $0x30] sm:$0xff] %vm278_vm2, %v1052_v54  ;;  %v1061_v14 = vadd.f32 %v1045_v21, %v1013_v49  ;;  %1885 = vpow2.f32 %v1286_v35  ;;  %v1870_v36 = vpop.eup %1869 }
 0x2a0   :  { %v1043_v60 = vpop.xlane.xlu0 %1042  ;;  %v1327_v38 = vld [vmem:[#allocation4 + $0x28] sm:$0xff]  ;;  %v1318_v63 = vsub.f32 %v1302_v13, %v1870_v36  ;;  %1887 = vrcp.f32 %v1319_v0 }
 0x2a1   :  { %1078 = vst.msk [vmem:[#allocation3 + $0x78] sm:$0xff] %vm278_vm2, %v1061_v14  ;;  %v1060_v62 = vadd.f32 %v1043_v60, %v1012_v55  ;;  %v1343_v17 = vadd.f32 1e-09, %v1327_v38 }
 0x2a2   :  { %v1872_v53 = vpop.eup %1871  ;;  %v1122_v16 = vpop.xlane.xlu1 %1121  ;;  %v1326_v50 = vld [vmem:[#allocation4 + $0x20] sm:$0xff]  ;;  %1889 = vrcp.f32 %v1318_v63 }
 0x2a3   :  { %v1874_v22 = vpop.eup %1873  ;;  %v1393_v23 = vmul.f32 0.6931472, %v1872_v53  ;;  %1077 = vst.msk [vmem:[#allocation3 + $0x70] sm:$0xff] %vm278_vm2, %v1060_v62  ;;  %v1140_v9 = vadd.f32 %v1122_v16, %v1092_v56  ;;  %v1342_v8 = vadd.f32 1e-09, %v1326_v50 }
 0x2a4   :  { %v1876_v11 = vpop.eup %1875  ;;  %v1297_v34 = vld [vmem:[#allocation3 + $0x38] sm:$0xff]  ;;  %v1120_v57 = vpop.xlane.xlu0 %1119 }
 0x2a5   :  { %v1878_v10 = vpop.eup %1877  ;;  %1421 = vst.msk [vmem:[%s3041_s4 + $0x18] sm:$0xff] %vm278_vm2, %v1393_v23  ;;  %v1391_v42 = vmul.f32 0.6931472, %v1876_v11  ;;  %v1313_v1 = vsub.f32 %v1297_v34, %v1868_v45  ;;  %1156 = vst.msk [vmem:[#allocation4 + $0x68] sm:$0xff] %vm278_vm2, %v1140_v9  ;;  %v1139_v52 = vadd.f32 %v1120_v57, %v1091_v59 }
 0x2a6   :  { %v1880_v25 = vpop.eup %1879  ;;  %v1365_v24 = vmul.f32 %v1878_v10, %v1343_v17  ;;  %v1296_v7 = vld [vmem:[#allocation3 + $0x30] sm:$0xff]  ;;  %v1110_v19 = vpop.xlane.xlu1 %1109 }
 0x2a7   :  { %v1882_v46 = vpop.eup %1881  ;;  %1420 = vst.msk [vmem:[%s3041_s4 + $0x10] sm:$0xff] %vm278_vm2, %v1391_v42  ;;  %v1409_v37 = vmul.f32 0.6931472, %v1880_v25  ;;  %1891 = vrcp.f32 %v1313_v1  ;;  %v1312_v39 = vsub.f32 %v1296_v7, %v1864_v3  ;;  %1155 = vst.msk [vmem:[#allocation4 + $0x60] sm:$0xff] %vm278_vm2, %v1139_v52  ;;  %v1134_v61 = vadd.f32 %v1110_v19, %v1086_v41 }
 0x2a8   :  { %v1884_v5 = vpop.eup %1883  ;;  %1893 = vlog2.f32 %v1365_v24  ;;  %v1363_v32 = vmul.f32 %v1882_v46, %v1342_v8  ;;  %v1305_v43 = vld [vmem:[#allocation3 + $0x78] sm:$0xff]  ;;  %v1108_v15 = vpop.xlane.xlu0 %1107 }
 0x2a9   :  { %1429 = vst.msk [vmem:[%s3041_s4 + $0x58] sm:$0xff] %vm278_vm2, %v1409_v37  ;;  %v1407_v12 = vmul.f32 0.6931472, %v1884_v5  ;;  %1895 = vrcp.f32 %v1312_v39  ;;  %v1321_v33 = vsub.f32 %v1305_v43, %v1874_v22  ;;  %1150 = vst.msk [vmem:[#allocation4 + $0x38] sm:$0xff] %vm278_vm2, %v1134_v61  ;;  %v1133_v30 = vadd.f32 %v1108_v15, %v1085_v6  ;;  %v1886_v28 = vpop.eup %1885 }
 0x2aa   :  { %1897 = vlog2.f32 %v1363_v32  ;;  %v1304_v47 = vld [vmem:[#allocation3 + $0x70] sm:$0xff]  ;;  %v1126_v2 = vpop.xlane.xlu1 %1125  ;;  %v1888_v35 = vpop.eup %1887 }
 0x2ab   :  { %1428 = vst.msk [vmem:[%s3041_s4 + $0x50] sm:$0xff] %vm278_vm2, %v1407_v12  ;;  %1899 = vrcp.f32 %v1321_v33  ;;  %v1320_v44 = vsub.f32 %v1304_v47, %v1886_v28  ;;  %1149 = vst.msk [vmem:[#allocation4 + $0x30] sm:$0xff] %vm278_vm2, %v1133_v30  ;;  %v1142_v4 = vadd.f32 %v1126_v2, %v1094_v58 }
 0x2ac   :  { %v1335_v40 = vld [vmem:[#allocation4 + $0x68] sm:$0xff]  ;;  %v1124_v20 = vpop.xlane.xlu0 %1123  ;;  %v1890_v51 = vpop.eup %1889 }
 0x2ad   :  { %1901 = vrcp.f32 %v1320_v44  ;;  %v1351_v27 = vadd.f32 1e-09, %v1335_v40  ;;  %1158 = vst.msk [vmem:[#allocation4 + $0x78] sm:$0xff] %vm278_vm2, %v1142_v4  ;;  %v1141_v18 = vadd.f32 %v1124_v20, %v1093_v26 }
 0x2ae   :  { %v1334_v31 = vld [vmem:[#allocation4 + $0x60] sm:$0xff] }
 0x2af   :  { %v1381_v48 = vmul.f32 %v1888_v35, %v1351_v27  ;;  %v1350_v49 = vadd.f32 1e-09, %v1334_v31  ;;  %1157 = vst.msk [vmem:[#allocation4 + $0x70] sm:$0xff] %vm278_vm2, %v1141_v18 }
 0x2b0   :  { %v1329_v54 = vld [vmem:[#allocation4 + $0x38] sm:$0xff] }
 0x2b1   :  { %v1892_v3 = vpop.eup %1891  ;;  %1903 = vlog2.f32 %v1381_v48  ;;  %v1379_v21 = vmul.f32 %v1890_v51, %v1350_v49  ;;  %v1345_v55 = vadd.f32 1e-09, %v1329_v54 }
 0x2b2   :  { %v1894_v29 = vpop.eup %1893  ;;  %v1328_v13 = vld [vmem:[#allocation4 + $0x30] sm:$0xff] }
 0x2b3   :  { %v1896_v14 = vpop.eup %1895  ;;  %v1397_v45 = vmul.f32 0.6931472, %v1894_v29  ;;  %1905 = vlog2.f32 %v1379_v21  ;;  %v1369_v0 = vmul.f32 %v1892_v3, %v1345_v55  ;;  %v1344_v60 = vadd.f32 1e-09, %v1328_v13 }
 0x2b4   :  { %v1898_v56 = vpop.eup %1897  ;;  %v1337_v36 = vld [vmem:[#allocation4 + $0x78] sm:$0xff] }
 0x2b5   :  { %v1900_v38 = vpop.eup %1899  ;;  %1423 = vst.msk [vmem:[%s3041_s4 + $0x28] sm:$0xff] %vm278_vm2, %v1397_v45  ;;  %v1395_v62 = vmul.f32 0.6931472, %v1898_v56  ;;  %1907 = vlog2.f32 %v1369_v0  ;;  %v1367_v53 = vmul.f32 %v1896_v14, %v1344_v60  ;;  %v1353_v63 = vadd.f32 1e-09, %v1337_v36 }
 0x2b6   :  { %v1336_v16 = vld [vmem:[#allocation4 + $0x70] sm:$0xff] }
 0x2b7   :  { %v1902_v59 = vpop.eup %1901  ;;  %1422 = vst.msk [vmem:[%s3041_s4 + $0x20] sm:$0xff] %vm278_vm2, %v1395_v62  ;;  %1909 = vlog2.f32 %v1367_v53  ;;  %v1385_v22 = vmul.f32 %v1900_v38, %v1353_v63  ;;  %v1352_v23 = vadd.f32 1e-09, %v1336_v16 }
 0x2b9   :  { %1911 = vlog2.f32 %v1385_v22  ;;  %v1383_v50 = vmul.f32 %v1902_v59, %v1352_v23 }
 0x2bb   :  { %v1904_v9 = vpop.eup %1903  ;;  %1913 = vlog2.f32 %v1383_v50 }
 0x2bc   :  { %v1413_v11 = vmul.f32 0.6931472, %v1904_v9 }
 0x2bd   :  { %v1906_v17 = vpop.eup %1905 }
 0x2be   :  { %1431 = vst.msk [vmem:[%s3041_s4 + $0x68] sm:$0xff] %vm278_vm2, %v1413_v11  ;;  %v1411_v34 = vmul.f32 0.6931472, %v1906_v17 }
 0x2bf   :  { %v1908_v57 = vpop.eup %1907 }
 0x2c0   :  { %1430 = vst.msk [vmem:[%s3041_s4 + $0x60] sm:$0xff] %vm278_vm2, %v1411_v34  ;;  %v1401_v41 = vmul.f32 0.6931472, %v1908_v57 }
 0x2c1   :  { %v1910_v10 = vpop.eup %1909 }
 0x2c2   :  { %1425 = vst.msk [vmem:[%s3041_s4 + $0x38] sm:$0xff] %vm278_vm2, %v1401_v41  ;;  %v1399_v42 = vmul.f32 0.6931472, %v1910_v10 }
 0x2c3   :  { %v1912_v1 = vpop.eup %1911 }
 0x2c4   :  { %1424 = vst.msk [vmem:[%s3041_s4 + $0x30] sm:$0xff] %vm278_vm2, %v1399_v42  ;;  %v1417_v52 = vmul.f32 0.6931472, %v1912_v1 }
 0x2c5   :  { %v1914_v25 = vpop.eup %1913 }
 0x2c6   :  { %1433 = vst.msk [vmem:[%s3041_s4 + $0x78] sm:$0xff] %vm278_vm2, %v1417_v52  ;;  %v1415_v24 = vmul.f32 0.6931472, %v1914_v25 }
 0x2c8   :  { %1432 = vst.msk [vmem:[%s3041_s4 + $0x70] sm:$0xff] %vm278_vm2, %v1415_v24 }

</bundles_post_ra>
